<compile_context>
chip_gen: v6e
topology: v6e:2x2x1
jax: 0.10.0
libtpu: 0.0.40
codegen_flags: <defaults>
</compile_context>

<pallas_src>
import numpy as np
import jax
import jax.numpy as jnp
from jax.experimental import pallas as pl
from jax.experimental.pallas import tpu as pltpu

LANE = 128


# --------------------------- model configuration --------------------------- #

def _conv_specs(input_dim, dim, n_downsample):
    """(cin, cout, stride) per Conv2dBlock, mirroring StyleEncoder.__init__."""
    specs = [(input_dim, dim, 2), (dim, dim, 1)]
    d = dim
    for _ in range(2):
        specs.append((d, 2 * d, 2))
        d *= 2
    for _ in range(n_downsample - 2):
        specs.append((d, d, 2))
    return specs, d


def conv_layer_cfgs(input_dim, dim, n_downsample, height, width):
    specs, d = _conv_specs(input_dim, dim, n_downsample)
    cfgs = []
    h, w = height, width
    for (cin, cout, s) in specs:
        hp = h + 2                                   # H padding only (ZeroPad2d(1))
        ho = (hp - 3) // s + 1
        wo = (w + 2 - 3) // s + 1                    # W padding folded into weights
        cfgs.append(dict(cin=cin, cout=cout, stride=s, hin=h, win=w,
                         hp=hp, ho=ho, wo=wo))
        h, w = ho, wo
    return cfgs, d


def _check_cfgs(cfgs, lane=LANE):
    """Static shape asserts the kernel's in-VMEM reads/stores rely on."""
    for i, cfg in enumerate(cfgs):
        assert cfg["win"] * cfg["cin"] <= lane, cfg      # input row fits a lane pitch
        assert cfg["wo"] * cfg["cout"] <= lane, cfg      # output row fits a lane pitch
        # strided kh-tap reads stay inside each image's H-padded block
        assert 2 + cfg["stride"] * (cfg["ho"] - 1) <= cfg["hp"] - 1, cfg
        if i + 1 < len(cfgs):
            nxt = cfgs[i + 1]
            assert (nxt["hin"], nxt["win"], nxt["cin"]) == \
                   (cfg["ho"], cfg["wo"], cfg["cout"]), (cfg, nxt)


# ------------------------------ fused kernel ------------------------------- #

def _build_kernel(cfgs, batch, lane=LANE):
    n_conv = len(cfgs)
    _check_cfgs(cfgs, lane)

    def kernel(*refs):
        i = 0
        x_ref = refs[i]; i += 1                           # (B*H0, W0*Cin0) raw NHWC rows
        conv_wb = []
        for _ in range(n_conv):
            conv_wb.append((refs[i], refs[i + 1]))        # (3*128,128) bf16 W, (1,128) bias
            i += 2
        prow, wfc, bfc, wc1, bc1, wc2, bc2 = refs[i:i + 7]; i += 7
        out_ref = refs[i]; i += 1
        aps = refs[i:i + n_conv]; i += n_conv             # H-padded activation slabs
        ylast = refs[i]; i += 1                           # last conv output slab
        assert i == len(refs)

        zrow = jnp.zeros((1, lane), jnp.float32)

        # (1) Zero ONLY the two H-pad border rows of each slab (ZeroPad2d rows).
        for li, cfg in enumerate(cfgs):
            hp = cfg["hp"]
            for b in range(batch):
                aps[li][pl.ds(b * hp, 1), :] = zrow
                aps[li][pl.ds(b * hp + hp - 1, 1), :] = zrow

        # (2) Scatter raw input rows into layer-0's slab interior; zero the
        #     unused high lanes once so the MXU never multiplies stale VMEM.
        c0 = cfgs[0]
        h0, hp0 = c0["hin"], c0["hp"]
        wc0 = c0["win"] * c0["cin"]
        zpad0 = jnp.zeros((h0, lane - wc0), jnp.float32)
        for b in range(batch):
            aps[0][pl.ds(b * hp0 + 1, h0), wc0:lane] = zpad0
            aps[0][pl.ds(b * hp0 + 1, h0), 0:wc0] = x_ref[pl.ds(b * h0, h0), :]

        # (3) Convs: per layer / per image, 3 accumulating matmuls (one per kh
        #     tap); kw offsets, W zero-padding, stride and lane padding all
        #     live in the block-structured weight, so the only store is ONE
        #     full-128-lane slab write per image.
        for li, cfg in enumerate(cfgs):
            s, hp, ho = cfg["stride"], cfg["hp"], cfg["ho"]
            src = aps[li]
            w_ref, b_ref = conv_wb[li]
            w_taps = [w_ref[kh * lane:(kh + 1) * lane, :] for kh in range(3)]
            bias = b_ref[...]
            if li + 1 < n_conv:
                dst, hpn, roff = aps[li + 1], cfgs[li + 1]["hp"], 1
            else:
                dst, hpn, roff = ylast, ho, 0
            for b in range(batch):
                acc = None
                for kh in range(3):
                    if s == 1:
                        lhs = src[pl.ds(b * hp + kh, ho), :]
                    else:
                        lhs = src[pl.ds(b * hp + kh, ho, s), :]   # sublane-strided read
                    part = jnp.dot(lhs.astype(jnp.bfloat16), w_taps[kh],
                                   preferred_element_type=jnp.float32)
                    acc = part if acc is None else acc + part
                y_b = jnp.maximum(acc + bias, 0.0)                # bias + ReLU, f32
                dst[pl.ds(b * hpn + roff, ho), :] = y_b           # lane-dense store

        # (4) Tail: GAP fused into the 1x1-conv/fc via a tiny row-sum matmul
        #     (1/HW folded into wfc); ClassBlock with eval BatchNorm1d folded
        #     into Linear1; dropout = identity (eval).
        pooled = jnp.dot(prow[...], ylast[...], preferred_element_type=jnp.float32)
        feat = jnp.dot(pooled, wfc[...], preferred_element_type=jnp.float32) + bfc[...]
        hcls = jnp.dot(feat, wc1[...], preferred_element_type=jnp.float32) + bc1[...]
        out = jnp.dot(hcls, wc2[...], preferred_element_type=jnp.float32) + bc2[...]
        out_ref[...] = out

    return kernel


def make_forward(cfgs, batch, lane=LANE):
    kernel = _build_kernel(cfgs, batch, lane)
    n_conv = len(cfgs)
    c0, last = cfgs[0], cfgs[-1]

    scratch_shapes = [pltpu.VMEM((batch * cfg["hp"], lane), jnp.float32)
                      for cfg in cfgs]                       # H-padded activation slabs
    scratch_shapes.append(pltpu.VMEM((batch * last["ho"], lane), jnp.float32))

    n_inputs = 1 + 2 * n_conv + 7
    vmem_spec = pl.BlockSpec(memory_space=pltpu.MemorySpace.VMEM)

    call = pl.pallas_call(
        kernel,
        out_shape=jax.ShapeDtypeStruct((batch, 8), jnp.float32),
        in_specs=[vmem_spec] * n_inputs,
        out_specs=vmem_spec,
        scratch_shapes=scratch_shapes,
    )

    def forward(x_nchw, prepared):
        # Only per-forward XLA prep left: NCHW -> NHWC transpose + flatten.
        x = jnp.transpose(x_nchw.astype(jnp.float32), (0, 2, 3, 1))
        x2d = x.reshape(batch * c0["hin"], c0["win"] * c0["cin"])
        return call(x2d, *prepared)

    return jax.jit(forward)


# -------------------------- parameter preparation -------------------------- #

def prepare_params(raw, cfgs, batch, lane=LANE):
    """Fold raw (PyTorch-layout-equivalent) params into the matrices the fused
    kernel consumes.  Runs once at init time (not on the forward path)."""
    prepared = []
    for (w, b, s), cfg in zip(raw["convs"], cfgs):
        cin, cout, win, wo = cfg["cin"], cfg["cout"], cfg["win"], cfg["wo"]
        w_np = np.asarray(w, np.float32)                       # (3,3,cin,cout) HWIO
        wbig = np.zeros((3 * lane, lane), np.float32)
        for kh in range(3):
            for kw in range(3):
                for o in range(wo):
                    jj = s * o + kw - 1                        # unpadded input column
                    if 0 <= jj < win:                          # else: ZeroPad2d width tap
                        wbig[kh * lane + jj * cin: kh * lane + (jj + 1) * cin,
                             o * cout:(o + 1) * cout] = w_np[kh, kw]
        bbig = np.zeros((1, lane), np.float32)
        bbig[0, :wo * cout] = np.tile(np.asarray(b, np.float32), wo)
        prepared += [jnp.asarray(wbig, jnp.bfloat16), jnp.asarray(bbig)]

    last = cfgs[-1]
    d, ho4, wo4 = last["cout"], last["ho"], last["wo"]
    hw = float(ho4 * wo4)

    # Row-sum matrix for per-image spatial-row pooling of the last conv slab.
    prow = np.zeros((batch, batch * ho4), np.float32)
    for b in range(batch):
        prow[b, b * ho4:(b + 1) * ho4] = 1.0

    # GAP fused into the 1x1-conv/fc: tile w_fc across the wo4 width positions
    # and fold the 1/HW mean scale in.
    wfc = np.asarray(raw["w_fc"], np.float32)                  # (d, 128)
    wfc_big = np.zeros((lane, wfc.shape[1]), np.float32)
    for o in range(wo4):
        wfc_big[o * d:(o + 1) * d, :] = wfc / hw

    # ClassBlock: fold eval-mode BatchNorm1d (running stats + affine) into Linear1.
    eps = 1e-5
    scale = np.asarray(raw["bn_gamma"], np.float32) / np.sqrt(
        np.asarray(raw["bn_var"], np.float32) + eps)
    wc1 = np.asarray(raw["w_cls1"], np.float32) * scale[None, :]
    bc1 = (np.asarray(raw["b_cls1"], np.float32)
           - np.asarray(raw["bn_mean"], np.float32)) * scale + np.asarray(
               raw["bn_beta"], np.float32)

    prepared += [
        jnp.asarray(prow),
        jnp.asarray(wfc_big),
        jnp.asarray(np.asarray(raw["b_fc"], np.float32).reshape(1, -1)),
        jnp.asarray(wc1),
        jnp.asarray(bc1.reshape(1, -1)),
        jnp.asarray(np.asarray(raw["w_cls2"], np.float32)),
        jnp.asarray(np.asarray(raw["b_cls2"], np.float32).reshape(1, -1)),
    ]
    return tuple(prepared)


def init_raw_params(key, input_dim=3, dim=4, n_downsample=2):
    specs, d = _conv_specs(input_dim, dim, n_downsample)
    keys = jax.random.split(key, 2 * len(specs) + 8)
    ki = iter(range(len(keys)))
    convs = []
    for (cin, cout, s) in specs:
        fan_in = 9 * cin
        w = jax.random.normal(keys[next(ki)], (3, 3, cin, cout), jnp.float32) * (2.0 / fan_in) ** 0.5
        b = jax.random.normal(keys[next(ki)], (cout,), jnp.float32) * 0.01
        convs.append((w, b, s))

    w_fc = jax.random.normal(keys[next(ki)], (d, 128), jnp.float32) * (1.0 / d) ** 0.5
    b_fc = jax.random.normal(keys[next(ki)], (128,), jnp.float32) * 0.01
    # ClassBlock: Linear(128,512) kaiming fan_out (bias 0); BN1d(512) defaults;
    # classifier Linear(512,8) std=0.001, bias 0.
    w_cls1 = jax.random.normal(keys[next(ki)], (128, 512), jnp.float32) * (2.0 / 512) ** 0.5
    b_cls1 = jnp.zeros((512,), jnp.float32)
    w_cls2 = jax.random.normal(keys[next(ki)], (512, 8), jnp.float32) * 0.001
    b_cls2 = jnp.zeros((8,), jnp.float32)
    return dict(convs=convs, w_fc=w_fc, b_fc=b_fc,
                w_cls1=w_cls1, b_cls1=b_cls1, w_cls2=w_cls2, b_cls2=b_cls2,
                bn_gamma=jnp.ones((512,), jnp.float32),
                bn_beta=jnp.zeros((512,), jnp.float32),
                bn_mean=jnp.zeros((512,), jnp.float32),
                bn_var=jnp.ones((512,), jnp.float32))


# --------------------------- pure-JAX reference ----------------------------- #

def reference_forward(x_nchw, raw):
    prec = jax.lax.Precision.HIGHEST
    x = jnp.transpose(x_nchw.astype(jnp.float32), (0, 2, 3, 1))
    for (w, b, s) in raw["convs"]:
        x = jax.lax.conv_general_dilated(
            x, w, window_strides=(s, s), padding=((1, 1), (1, 1)),
            dimension_numbers=("NHWC", "HWIO", "NHWC"), precision=prec)
        x = jax.nn.relu(x + b)
    pooled = jnp.mean(x, axis=(1, 2))
    feat = jnp.dot(pooled, raw["w_fc"], precision=prec) + raw["b_fc"]
    eps = 1e-5
    scale = raw["bn_gamma"] / jnp.sqrt(raw["bn_var"] + eps)
    h = (jnp.dot(feat, raw["w_cls1"], precision=prec) + raw["b_cls1"]
         - raw["bn_mean"]) * scale + raw["bn_beta"]
    return jnp.dot(h, raw["w_cls2"], precision=prec) + raw["b_cls2"]


# ----------------------------------- main ----------------------------------- #

if __name__ == "__main__":
    B, H, W = 2, 16, 16
    INPUT_DIM, DIM, N_DOWNSAMPLE = 3, 4, 2

    key = jax.random.PRNGKey(0)
    raw = init_raw_params(key, INPUT_DIM, DIM, N_DOWNSAMPLE)
    cfgs, _ = conv_layer_cfgs(INPUT_DIM, DIM, N_DOWNSAMPLE, H, W)
    prepared = prepare_params(raw, cfgs, B)
    forward = make_forward(cfgs, B)

    x = jax.random.normal(jax.random.fold_in(key, 123), (B, INPUT_DIM, H, W), jnp.float32)

    out = jax.block_until_ready(forward(x, prepared))
    assert out.shape == (B, 8), out.shape
    assert bool(jnp.all(jnp.isfinite(out)))

    # correctness check against a pure-JAX/XLA reference of the same forward
    ref = jax.block_until_ready(reference_forward(x, raw))
    max_diff = float(jnp.max(jnp.abs(out - ref)))
    assert bool(jnp.allclose(out, ref, rtol=2e-2, atol=2e-3)), max_diff

    print("KERNEL_OK")
</pallas_src>

<mosaic_0001>
module attributes {stable_mosaic.version = 11 : i64} {
  func.func @kernel(%arg0: memref<32x48xf32, #tpu.memory_space<vmem>>, %arg1: memref<384x128xbf16, #tpu.memory_space<vmem>>, %arg2: memref<1x128xf32, #tpu.memory_space<vmem>>, %arg3: memref<384x128xbf16, #tpu.memory_space<vmem>>, %arg4: memref<1x128xf32, #tpu.memory_space<vmem>>, %arg5: memref<384x128xbf16, #tpu.memory_space<vmem>>, %arg6: memref<1x128xf32, #tpu.memory_space<vmem>>, %arg7: memref<384x128xbf16, #tpu.memory_space<vmem>>, %arg8: memref<1x128xf32, #tpu.memory_space<vmem>>, %arg9: memref<2x4xf32, #tpu.memory_space<vmem>>, %arg10: memref<128x128xf32, #tpu.memory_space<vmem>>, %arg11: memref<1x128xf32, #tpu.memory_space<vmem>>, %arg12: memref<128x512xf32, #tpu.memory_space<vmem>>, %arg13: memref<1x512xf32, #tpu.memory_space<vmem>>, %arg14: memref<512x8xf32, #tpu.memory_space<vmem>>, %arg15: memref<1x8xf32, #tpu.memory_space<vmem>>, %arg16: memref<2x8xf32, #tpu.memory_space<vmem>>, %arg17: memref<36x128xf32, #tpu.memory_space<vmem>>, %arg18: memref<20x128xf32, #tpu.memory_space<vmem>>, %arg19: memref<20x128xf32, #tpu.memory_space<vmem>>, %arg20: memref<12x128xf32, #tpu.memory_space<vmem>>, %arg21: memref<4x128xf32, #tpu.memory_space<vmem>>) attributes {dimension_semantics = [], scalar_prefetch = 0 : i64, scratch_operands = 5 : i64, tpu.core_type = #tpu.core_type<tc>} {
    %cst = arith.constant 0.000000e+00 : f32
    %0 = vector.broadcast %cst : f32 to vector<1x128xf32>
    %c0 = arith.constant 0 : index
    %c0_0 = arith.constant 0 : index
    %1 = vector.load %arg17[%c0, %c0_0] : memref<36x128xf32, #tpu.memory_space<vmem>>, vector<1x128xf32>
    tpu.vector_store %arg17[%c0, %c0_0], %0 {strides = array<i32>} : memref<36x128xf32, #tpu.memory_space<vmem>>, vector<1x128xf32>,
    %c17 = arith.constant 17 : index
    %c0_1 = arith.constant 0 : index
    %2 = vector.load %arg17[%c17, %c0_1] : memref<36x128xf32, #tpu.memory_space<vmem>>, vector<1x128xf32>
    tpu.vector_store %arg17[%c17, %c0_1], %0 {strides = array<i32>} : memref<36x128xf32, #tpu.memory_space<vmem>>, vector<1x128xf32>,
    %c18 = arith.constant 18 : index
    %c0_2 = arith.constant 0 : index
    %3 = vector.load %arg17[%c18, %c0_2] : memref<36x128xf32, #tpu.memory_space<vmem>>, vector<1x128xf32>
    tpu.vector_store %arg17[%c18, %c0_2], %0 {strides = array<i32>} : memref<36x128xf32, #tpu.memory_space<vmem>>, vector<1x128xf32>,
    %c35 = arith.constant 35 : index
    %c0_3 = arith.constant 0 : index
    %4 = vector.load %arg17[%c35, %c0_3] : memref<36x128xf32, #tpu.memory_space<vmem>>, vector<1x128xf32>
    tpu.vector_store %arg17[%c35, %c0_3], %0 {strides = array<i32>} : memref<36x128xf32, #tpu.memory_space<vmem>>, vector<1x128xf32>,
    %c0_4 = arith.constant 0 : index
    %c0_5 = arith.constant 0 : index
    %5 = vector.load %arg18[%c0_4, %c0_5] : memref<20x128xf32, #tpu.memory_space<vmem>>, vector<1x128xf32>
    tpu.vector_store %arg18[%c0_4, %c0_5], %0 {strides = array<i32>} : memref<20x128xf32, #tpu.memory_space<vmem>>, vector<1x128xf32>,
    %c9 = arith.constant 9 : index
    %c0_6 = arith.constant 0 : index
    %6 = vector.load %arg18[%c9, %c0_6] : memref<20x128xf32, #tpu.memory_space<vmem>>, vector<1x128xf32>
    tpu.vector_store %arg18[%c9, %c0_6], %0 {strides = array<i32>} : memref<20x128xf32, #tpu.memory_space<vmem>>, vector<1x128xf32>,
    %c10 = arith.constant 10 : index
    %c0_7 = arith.constant 0 : index
    %7 = vector.load %arg18[%c10, %c0_7] : memref<20x128xf32, #tpu.memory_space<vmem>>, vector<1x128xf32>
    tpu.vector_store %arg18[%c10, %c0_7], %0 {strides = array<i32>} : memref<20x128xf32, #tpu.memory_space<vmem>>, vector<1x128xf32>,
    %c19 = arith.constant 19 : index
    %c0_8 = arith.constant 0 : index
    %8 = vector.load %arg18[%c19, %c0_8] : memref<20x128xf32, #tpu.memory_space<vmem>>, vector<1x128xf32>
    tpu.vector_store %arg18[%c19, %c0_8], %0 {strides = array<i32>} : memref<20x128xf32, #tpu.memory_space<vmem>>, vector<1x128xf32>,
    %c0_9 = arith.constant 0 : index
    %c0_10 = arith.constant 0 : index
    %9 = vector.load %arg19[%c0_9, %c0_10] : memref<20x128xf32, #tpu.memory_space<vmem>>, vector<1x128xf32>
    tpu.vector_store %arg19[%c0_9, %c0_10], %0 {strides = array<i32>} : memref<20x128xf32, #tpu.memory_space<vmem>>, vector<1x128xf32>,
    %c9_11 = arith.constant 9 : index
    %c0_12 = arith.constant 0 : index
    %10 = vector.load %arg19[%c9_11, %c0_12] : memref<20x128xf32, #tpu.memory_space<vmem>>, vector<1x128xf32>
    tpu.vector_store %arg19[%c9_11, %c0_12], %0 {strides = array<i32>} : memref<20x128xf32, #tpu.memory_space<vmem>>, vector<1x128xf32>,
    %c10_13 = arith.constant 10 : index
    %c0_14 = arith.constant 0 : index
    %11 = vector.load %arg19[%c10_13, %c0_14] : memref<20x128xf32, #tpu.memory_space<vmem>>, vector<1x128xf32>
    tpu.vector_store %arg19[%c10_13, %c0_14], %0 {strides = array<i32>} : memref<20x128xf32, #tpu.memory_space<vmem>>, vector<1x128xf32>,
    %c19_15 = arith.constant 19 : index
    %c0_16 = arith.constant 0 : index
    %12 = vector.load %arg19[%c19_15, %c0_16] : memref<20x128xf32, #tpu.memory_space<vmem>>, vector<1x128xf32>
    tpu.vector_store %arg19[%c19_15, %c0_16], %0 {strides = array<i32>} : memref<20x128xf32, #tpu.memory_space<vmem>>, vector<1x128xf32>,
    %c0_17 = arith.constant 0 : index
    %c0_18 = arith.constant 0 : index
    %13 = vector.load %arg20[%c0_17, %c0_18] : memref<12x128xf32, #tpu.memory_space<vmem>>, vector<1x128xf32>
    tpu.vector_store %arg20[%c0_17, %c0_18], %0 {strides = array<i32>} : memref<12x128xf32, #tpu.memory_space<vmem>>, vector<1x128xf32>,
    %c5 = arith.constant 5 : index
    %c0_19 = arith.constant 0 : index
    %14 = vector.load %arg20[%c5, %c0_19] : memref<12x128xf32, #tpu.memory_space<vmem>>, vector<1x128xf32>
    tpu.vector_store %arg20[%c5, %c0_19], %0 {strides = array<i32>} : memref<12x128xf32, #tpu.memory_space<vmem>>, vector<1x128xf32>,
    %c6 = arith.constant 6 : index
    %c0_20 = arith.constant 0 : index
    %15 = vector.load %arg20[%c6, %c0_20] : memref<12x128xf32, #tpu.memory_space<vmem>>, vector<1x128xf32>
    tpu.vector_store %arg20[%c6, %c0_20], %0 {strides = array<i32>} : memref<12x128xf32, #tpu.memory_space<vmem>>, vector<1x128xf32>,
    %c11 = arith.constant 11 : index
    %c0_21 = arith.constant 0 : index
    %16 = vector.load %arg20[%c11, %c0_21] : memref<12x128xf32, #tpu.memory_space<vmem>>, vector<1x128xf32>
    tpu.vector_store %arg20[%c11, %c0_21], %0 {strides = array<i32>} : memref<12x128xf32, #tpu.memory_space<vmem>>, vector<1x128xf32>,
    %cst_22 = arith.constant 0.000000e+00 : f32
    %17 = vector.broadcast %cst_22 : f32 to vector<16x80xf32>
    %c1 = arith.constant 1 : index
    %c48 = arith.constant 48 : index
    %18 = vector.load %arg17[%c1, %c48] : memref<36x128xf32, #tpu.memory_space<vmem>>, vector<16x80xf32>
    tpu.vector_store %arg17[%c1, %c48], %17 {strides = array<i32>} : memref<36x128xf32, #tpu.memory_space<vmem>>, vector<16x80xf32>,
    %c0_23 = arith.constant 0 : index
    %c0_24 = arith.constant 0 : index
    %19 = vector.load %arg0[%c0_23, %c0_24] : memref<32x48xf32, #tpu.memory_space<vmem>>, vector<16x48xf32>
    %c1_25 = arith.constant 1 : index
    %c0_26 = arith.constant 0 : index
    %20 = vector.load %arg17[%c1_25, %c0_26] : memref<36x128xf32, #tpu.memory_space<vmem>>, vector<16x48xf32>
    tpu.vector_store %arg17[%c1_25, %c0_26], %19 {strides = array<i32>} : memref<36x128xf32, #tpu.memory_space<vmem>>, vector<16x48xf32>,
    %c19_27 = arith.constant 19 : index
    %c48_28 = arith.constant 48 : index
    %21 = vector.load %arg17[%c19_27, %c48_28] : memref<36x128xf32, #tpu.memory_space<vmem>>, vector<16x80xf32>
    tpu.vector_store %arg17[%c19_27, %c48_28], %17 {strides = array<i32>} : memref<36x128xf32, #tpu.memory_space<vmem>>, vector<16x80xf32>,
    %c16 = arith.constant 16 : index
    %c0_29 = arith.constant 0 : index
    %22 = vector.load %arg0[%c16, %c0_29] : memref<32x48xf32, #tpu.memory_space<vmem>>, vector<16x48xf32>
    %c19_30 = arith.constant 19 : index
    %c0_31 = arith.constant 0 : index
    %23 = vector.load %arg17[%c19_30, %c0_31] : memref<36x128xf32, #tpu.memory_space<vmem>>, vector<16x48xf32>
    tpu.vector_store %arg17[%c19_30, %c0_31], %22 {strides = array<i32>} : memref<36x128xf32, #tpu.memory_space<vmem>>, vector<16x48xf32>,
    %c0_32 = arith.constant 0 : index
    %c0_33 = arith.constant 0 : index
    %24 = vector.load %arg1[%c0_32, %c0_33] : memref<384x128xbf16, #tpu.memory_space<vmem>>, vector<128x128xbf16>
    %c128 = arith.constant 128 : index
    %c0_34 = arith.constant 0 : index
    %25 = vector.load %arg1[%c128, %c0_34] : memref<384x128xbf16, #tpu.memory_space<vmem>>, vector<128x128xbf16>
    %c256 = arith.constant 256 : index
    %c0_35 = arith.constant 0 : index
    %26 = vector.load %arg1[%c256, %c0_35] : memref<384x128xbf16, #tpu.memory_space<vmem>>, vector<128x128xbf16>
    %c0_36 = arith.constant 0 : index
    %c0_37 = arith.constant 0 : index
    %27 = vector.load %arg2[%c0_36, %c0_37] : memref<1x128xf32, #tpu.memory_space<vmem>>, vector<1x128xf32>
    %c0_38 = arith.constant 0 : index
    %c0_39 = arith.constant 0 : index
    %28 = tpu.strided_load %arg17[%c0_38, %c0_39] {strides = array<i32: 2, 1>} : memref<36x128xf32, #tpu.memory_space<vmem>>, vector<8x128xf32>
    %29 = arith.truncf %28 : vector<8x128xf32> to vector<8x128xbf16>
    %cst_40 = arith.constant dense<0.000000e+00> : vector<8x128xf32>
    %30 = tpu.matmul %29, %24, %cst_40 {dimension_numbers = #tpu.dot_dimension_numbers<[1], [0], [0], [1], [0, 0, 1, 1], [], []>} : vector<8x128xbf16>, vector<128x128xbf16>, vector<8x128xf32> -> vector<8x128xf32>
    %c1_41 = arith.constant 1 : index
    %c0_42 = arith.constant 0 : index
    %31 = tpu.strided_load %arg17[%c1_41, %c0_42] {strides = array<i32: 2, 1>} : memref<36x128xf32, #tpu.memory_space<vmem>>, vector<8x128xf32>
    %32 = arith.truncf %31 : vector<8x128xf32> to vector<8x128xbf16>
    %cst_43 = arith.constant dense<0.000000e+00> : vector<8x128xf32>
    %33 = tpu.matmul %32, %25, %cst_43 {dimension_numbers = #tpu.dot_dimension_numbers<[1], [0], [0], [1], [0, 0, 1, 1], [], []>} : vector<8x128xbf16>, vector<128x128xbf16>, vector<8x128xf32> -> vector<8x128xf32>
    %34 = arith.addf %30, %33 : vector<8x128xf32>
    %c2 = arith.constant 2 : index
    %c0_44 = arith.constant 0 : index
    %35 = tpu.strided_load %arg17[%c2, %c0_44] {strides = array<i32: 2, 1>} : memref<36x128xf32, #tpu.memory_space<vmem>>, vector<8x128xf32>
    %36 = arith.truncf %35 : vector<8x128xf32> to vector<8x128xbf16>
    %cst_45 = arith.constant dense<0.000000e+00> : vector<8x128xf32>
    %37 = tpu.matmul %36, %26, %cst_45 {dimension_numbers = #tpu.dot_dimension_numbers<[1], [0], [0], [1], [0, 0, 1, 1], [], []>} : vector<8x128xbf16>, vector<128x128xbf16>, vector<8x128xf32> -> vector<8x128xf32>
    %38 = arith.addf %34, %37 : vector<8x128xf32>
    %39 = vector.broadcast %27 : vector<1x128xf32> to vector<8x128xf32>
    %40 = arith.addf %38, %39 : vector<8x128xf32>
    %cst_46 = arith.constant 0.000000e+00 : f32
    %41 = vector.broadcast %cst_46 : f32 to vector<8x128xf32>
    %42 = arith.maximumf %40, %41 : vector<8x128xf32>
    %c1_47 = arith.constant 1 : index
    %c0_48 = arith.constant 0 : index
    %43 = vector.load %arg18[%c1_47, %c0_48] : memref<20x128xf32, #tpu.memory_space<vmem>>, vector<8x128xf32>
    tpu.vector_store %arg18[%c1_47, %c0_48], %42 {strides = array<i32>} : memref<20x128xf32, #tpu.memory_space<vmem>>, vector<8x128xf32>,
    %c18_49 = arith.constant 18 : index
    %c0_50 = arith.constant 0 : index
    %44 = tpu.strided_load %arg17[%c18_49, %c0_50] {strides = array<i32: 2, 1>} : memref<36x128xf32, #tpu.memory_space<vmem>>, vector<8x128xf32>
    %45 = arith.truncf %44 : vector<8x128xf32> to vector<8x128xbf16>
    %cst_51 = arith.constant dense<0.000000e+00> : vector<8x128xf32>
    %46 = tpu.matmul %45, %24, %cst_51 {dimension_numbers = #tpu.dot_dimension_numbers<[1], [0], [0], [1], [0, 0, 1, 1], [], []>} : vector<8x128xbf16>, vector<128x128xbf16>, vector<8x128xf32> -> vector<8x128xf32>
    %c19_52 = arith.constant 19 : index
    %c0_53 = arith.constant 0 : index
    %47 = tpu.strided_load %arg17[%c19_52, %c0_53] {strides = array<i32: 2, 1>} : memref<36x128xf32, #tpu.memory_space<vmem>>, vector<8x128xf32>
    %48 = arith.truncf %47 : vector<8x128xf32> to vector<8x128xbf16>
    %cst_54 = arith.constant dense<0.000000e+00> : vector<8x128xf32>
    %49 = tpu.matmul %48, %25, %cst_54 {dimension_numbers = #tpu.dot_dimension_numbers<[1], [0], [0], [1], [0, 0, 1, 1], [], []>} : vector<8x128xbf16>, vector<128x128xbf16>, vector<8x128xf32> -> vector<8x128xf32>
    %50 = arith.addf %46, %49 : vector<8x128xf32>
    %c20 = arith.constant 20 : index
    %c0_55 = arith.constant 0 : index
    %51 = tpu.strided_load %arg17[%c20, %c0_55] {strides = array<i32: 2, 1>} : memref<36x128xf32, #tpu.memory_space<vmem>>, vector<8x128xf32>
    %52 = arith.truncf %51 : vector<8x128xf32> to vector<8x128xbf16>
    %cst_56 = arith.constant dense<0.000000e+00> : vector<8x128xf32>
    %53 = tpu.matmul %52, %26, %cst_56 {dimension_numbers = #tpu.dot_dimension_numbers<[1], [0], [0], [1], [0, 0, 1, 1], [], []>} : vector<8x128xbf16>, vector<128x128xbf16>, vector<8x128xf32> -> vector<8x128xf32>
    %54 = arith.addf %50, %53 : vector<8x128xf32>
    %55 = vector.broadcast %27 : vector<1x128xf32> to vector<8x128xf32>
    %56 = arith.addf %54, %55 : vector<8x128xf32>
    %cst_57 = arith.constant 0.000000e+00 : f32
    %57 = vector.broadcast %cst_57 : f32 to vector<8x128xf32>
    %58 = arith.maximumf %56, %57 : vector<8x128xf32>
    %c11_58 = arith.constant 11 : index
    %c0_59 = arith.constant 0 : index
    %59 = vector.load %arg18[%c11_58, %c0_59] : memref<20x128xf32, #tpu.memory_space<vmem>>, vector<8x128xf32>
    tpu.vector_store %arg18[%c11_58, %c0_59], %58 {strides = array<i32>} : memref<20x128xf32, #tpu.memory_space<vmem>>, vector<8x128xf32>,
    %c0_60 = arith.constant 0 : index
    %c0_61 = arith.constant 0 : index
    %60 = vector.load %arg3[%c0_60, %c0_61] : memref<384x128xbf16, #tpu.memory_space<vmem>>, vector<128x128xbf16>
    %c128_62 = arith.constant 128 : index
    %c0_63 = arith.constant 0 : index
    %61 = vector.load %arg3[%c128_62, %c0_63] : memref<384x128xbf16, #tpu.memory_space<vmem>>, vector<128x128xbf16>
    %c256_64 = arith.constant 256 : index
    %c0_65 = arith.constant 0 : index
    %62 = vector.load %arg3[%c256_64, %c0_65] : memref<384x128xbf16, #tpu.memory_space<vmem>>, vector<128x128xbf16>
    %c0_66 = arith.constant 0 : index
    %c0_67 = arith.constant 0 : index
    %63 = vector.load %arg4[%c0_66, %c0_67] : memref<1x128xf32, #tpu.memory_space<vmem>>, vector<1x128xf32>
    %c0_68 = arith.constant 0 : index
    %c0_69 = arith.constant 0 : index
    %64 = vector.load %arg18[%c0_68, %c0_69] : memref<20x128xf32, #tpu.memory_space<vmem>>, vector<8x128xf32>
    %65 = arith.truncf %64 : vector<8x128xf32> to vector<8x128xbf16>
    %cst_70 = arith.constant dense<0.000000e+00> : vector<8x128xf32>
    %66 = tpu.matmul %65, %60, %cst_70 {dimension_numbers = #tpu.dot_dimension_numbers<[1], [0], [0], [1], [0, 0, 1, 1], [], []>} : vector<8x128xbf16>, vector<128x128xbf16>, vector<8x128xf32> -> vector<8x128xf32>
    %c1_71 = arith.constant 1 : index
    %c0_72 = arith.constant 0 : index
    %67 = vector.load %arg18[%c1_71, %c0_72] : memref<20x128xf32, #tpu.memory_space<vmem>>, vector<8x128xf32>
    %68 = arith.truncf %67 : vector<8x128xf32> to vector<8x128xbf16>
    %cst_73 = arith.constant dense<0.000000e+00> : vector<8x128xf32>
    %69 = tpu.matmul %68, %61, %cst_73 {dimension_numbers = #tpu.dot_dimension_numbers<[1], [0], [0], [1], [0, 0, 1, 1], [], []>} : vector<8x128xbf16>, vector<128x128xbf16>, vector<8x128xf32> -> vector<8x128xf32>
    %70 = arith.addf %66, %69 : vector<8x128xf32>
    %c2_74 = arith.constant 2 : index
    %c0_75 = arith.constant 0 : index
    %71 = vector.load %arg18[%c2_74, %c0_75] : memref<20x128xf32, #tpu.memory_space<vmem>>, vector<8x128xf32>
    %72 = arith.truncf %71 : vector<8x128xf32> to vector<8x128xbf16>
    %cst_76 = arith.constant dense<0.000000e+00> : vector<8x128xf32>
    %73 = tpu.matmul %72, %62, %cst_76 {dimension_numbers = #tpu.dot_dimension_numbers<[1], [0], [0], [1], [0, 0, 1, 1], [], []>} : vector<8x128xbf16>, vector<128x128xbf16>, vector<8x128xf32> -> vector<8x128xf32>
    %74 = arith.addf %70, %73 : vector<8x128xf32>
    %75 = vector.broadcast %63 : vector<1x128xf32> to vector<8x128xf32>
    %76 = arith.addf %74, %75 : vector<8x128xf32>
    %cst_77 = arith.constant 0.000000e+00 : f32
    %77 = vector.broadcast %cst_77 : f32 to vector<8x128xf32>
    %78 = arith.maximumf %76, %77 : vector<8x128xf32>
    %c1_78 = arith.constant 1 : index
    %c0_79 = arith.constant 0 : index
    %79 = vector.load %arg19[%c1_78, %c0_79] : memref<20x128xf32, #tpu.memory_space<vmem>>, vector<8x128xf32>
    tpu.vector_store %arg19[%c1_78, %c0_79], %78 {strides = array<i32>} : memref<20x128xf32, #tpu.memory_space<vmem>>, vector<8x128xf32>,
    %c10_80 = arith.constant 10 : index
    %c0_81 = arith.constant 0 : index
    %80 = vector.load %arg18[%c10_80, %c0_81] : memref<20x128xf32, #tpu.memory_space<vmem>>, vector<8x128xf32>
    %81 = arith.truncf %80 : vector<8x128xf32> to vector<8x128xbf16>
    %cst_82 = arith.constant dense<0.000000e+00> : vector<8x128xf32>
    %82 = tpu.matmul %81, %60, %cst_82 {dimension_numbers = #tpu.dot_dimension_numbers<[1], [0], [0], [1], [0, 0, 1, 1], [], []>} : vector<8x128xbf16>, vector<128x128xbf16>, vector<8x128xf32> -> vector<8x128xf32>
    %c11_83 = arith.constant 11 : index
    %c0_84 = arith.constant 0 : index
    %83 = vector.load %arg18[%c11_83, %c0_84] : memref<20x128xf32, #tpu.memory_space<vmem>>, vector<8x128xf32>
    %84 = arith.truncf %83 : vector<8x128xf32> to vector<8x128xbf16>
    %cst_85 = arith.constant dense<0.000000e+00> : vector<8x128xf32>
    %85 = tpu.matmul %84, %61, %cst_85 {dimension_numbers = #tpu.dot_dimension_numbers<[1], [0], [0], [1], [0, 0, 1, 1], [], []>} : vector<8x128xbf16>, vector<128x128xbf16>, vector<8x128xf32> -> vector<8x128xf32>
    %86 = arith.addf %82, %85 : vector<8x128xf32>
    %c12 = arith.constant 12 : index
    %c0_86 = arith.constant 0 : index
    %87 = vector.load %arg18[%c12, %c0_86] : memref<20x128xf32, #tpu.memory_space<vmem>>, vector<8x128xf32>
    %88 = arith.truncf %87 : vector<8x128xf32> to vector<8x128xbf16>
    %cst_87 = arith.constant dense<0.000000e+00> : vector<8x128xf32>
    %89 = tpu.matmul %88, %62, %cst_87 {dimension_numbers = #tpu.dot_dimension_numbers<[1], [0], [0], [1], [0, 0, 1, 1], [], []>} : vector<8x128xbf16>, vector<128x128xbf16>, vector<8x128xf32> -> vector<8x128xf32>
    %90 = arith.addf %86, %89 : vector<8x128xf32>
    %91 = vector.broadcast %63 : vector<1x128xf32> to vector<8x128xf32>
    %92 = arith.addf %90, %91 : vector<8x128xf32>
    %cst_88 = arith.constant 0.000000e+00 : f32
    %93 = vector.broadcast %cst_88 : f32 to vector<8x128xf32>
    %94 = arith.maximumf %92, %93 : vector<8x128xf32>
    %c11_89 = arith.constant 11 : index
    %c0_90 = arith.constant 0 : index
    %95 = vector.load %arg19[%c11_89, %c0_90] : memref<20x128xf32, #tpu.memory_space<vmem>>, vector<8x128xf32>
    tpu.vector_store %arg19[%c11_89, %c0_90], %94 {strides = array<i32>} : memref<20x128xf32, #tpu.memory_space<vmem>>, vector<8x128xf32>,
    %c0_91 = arith.constant 0 : index
    %c0_92 = arith.constant 0 : index
    %96 = vector.load %arg5[%c0_91, %c0_92] : memref<384x128xbf16, #tpu.memory_space<vmem>>, vector<128x128xbf16>
    %c128_93 = arith.constant 128 : index
    %c0_94 = arith.constant 0 : index
    %97 = vector.load %arg5[%c128_93, %c0_94] : memref<384x128xbf16, #tpu.memory_space<vmem>>, vector<128x128xbf16>
    %c256_95 = arith.constant 256 : index
    %c0_96 = arith.constant 0 : index
    %98 = vector.load %arg5[%c256_95, %c0_96] : memref<384x128xbf16, #tpu.memory_space<vmem>>, vector<128x128xbf16>
    %c0_97 = arith.constant 0 : index
    %c0_98 = arith.constant 0 : index
    %99 = vector.load %arg6[%c0_97, %c0_98] : memref<1x128xf32, #tpu.memory_space<vmem>>, vector<1x128xf32>
    %c0_99 = arith.constant 0 : index
    %c0_100 = arith.constant 0 : index
    %100 = tpu.strided_load %arg19[%c0_99, %c0_100] {strides = array<i32: 2, 1>} : memref<20x128xf32, #tpu.memory_space<vmem>>, vector<4x128xf32>
    %101 = arith.truncf %100 : vector<4x128xf32> to vector<4x128xbf16>
    %cst_101 = arith.constant dense<0.000000e+00> : vector<4x128xf32>
    %102 = tpu.matmul %101, %96, %cst_101 {dimension_numbers = #tpu.dot_dimension_numbers<[1], [0], [0], [1], [0, 0, 1, 1], [], []>} : vector<4x128xbf16>, vector<128x128xbf16>, vector<4x128xf32> -> vector<4x128xf32>
    %c1_102 = arith.constant 1 : index
    %c0_103 = arith.constant 0 : index
    %103 = tpu.strided_load %arg19[%c1_102, %c0_103] {strides = array<i32: 2, 1>} : memref<20x128xf32, #tpu.memory_space<vmem>>, vector<4x128xf32>
    %104 = arith.truncf %103 : vector<4x128xf32> to vector<4x128xbf16>
    %cst_104 = arith.constant dense<0.000000e+00> : vector<4x128xf32>
    %105 = tpu.matmul %104, %97, %cst_104 {dimension_numbers = #tpu.dot_dimension_numbers<[1], [0], [0], [1], [0, 0, 1, 1], [], []>} : vector<4x128xbf16>, vector<128x128xbf16>, vector<4x128xf32> -> vector<4x128xf32>
    %106 = arith.addf %102, %105 : vector<4x128xf32>
    %c2_105 = arith.constant 2 : index
    %c0_106 = arith.constant 0 : index
    %107 = tpu.strided_load %arg19[%c2_105, %c0_106] {strides = array<i32: 2, 1>} : memref<20x128xf32, #tpu.memory_space<vmem>>, vector<4x128xf32>
    %108 = arith.truncf %107 : vector<4x128xf32> to vector<4x128xbf16>
    %cst_107 = arith.constant dense<0.000000e+00> : vector<4x128xf32>
    %109 = tpu.matmul %108, %98, %cst_107 {dimension_numbers = #tpu.dot_dimension_numbers<[1], [0], [0], [1], [0, 0, 1, 1], [], []>} : vector<4x128xbf16>, vector<128x128xbf16>, vector<4x128xf32> -> vector<4x128xf32>
    %110 = arith.addf %106, %109 : vector<4x128xf32>
    %111 = vector.broadcast %99 : vector<1x128xf32> to vector<4x128xf32>
    %112 = arith.addf %110, %111 : vector<4x128xf32>
    %cst_108 = arith.constant 0.000000e+00 : f32
    %113 = vector.broadcast %cst_108 : f32 to vector<4x128xf32>
    %114 = arith.maximumf %112, %113 : vector<4x128xf32>
    %c1_109 = arith.constant 1 : index
    %c0_110 = arith.constant 0 : index
    %115 = vector.load %arg20[%c1_109, %c0_110] : memref<12x128xf32, #tpu.memory_space<vmem>>, vector<4x128xf32>
    tpu.vector_store %arg20[%c1_109, %c0_110], %114 {strides = array<i32>} : memref<12x128xf32, #tpu.memory_space<vmem>>, vector<4x128xf32>,
    %c10_111 = arith.constant 10 : index
    %c0_112 = arith.constant 0 : index
    %116 = tpu.strided_load %arg19[%c10_111, %c0_112] {strides = array<i32: 2, 1>} : memref<20x128xf32, #tpu.memory_space<vmem>>, vector<4x128xf32>
    %117 = arith.truncf %116 : vector<4x128xf32> to vector<4x128xbf16>
    %cst_113 = arith.constant dense<0.000000e+00> : vector<4x128xf32>
    %118 = tpu.matmul %117, %96, %cst_113 {dimension_numbers = #tpu.dot_dimension_numbers<[1], [0], [0], [1], [0, 0, 1, 1], [], []>} : vector<4x128xbf16>, vector<128x128xbf16>, vector<4x128xf32> -> vector<4x128xf32>
    %c11_114 = arith.constant 11 : index
    %c0_115 = arith.constant 0 : index
    %119 = tpu.strided_load %arg19[%c11_114, %c0_115] {strides = array<i32: 2, 1>} : memref<20x128xf32, #tpu.memory_space<vmem>>, vector<4x128xf32>
    %120 = arith.truncf %119 : vector<4x128xf32> to vector<4x128xbf16>
    %cst_116 = arith.constant dense<0.000000e+00> : vector<4x128xf32>
    %121 = tpu.matmul %120, %97, %cst_116 {dimension_numbers = #tpu.dot_dimension_numbers<[1], [0], [0], [1], [0, 0, 1, 1], [], []>} : vector<4x128xbf16>, vector<128x128xbf16>, vector<4x128xf32> -> vector<4x128xf32>
    %122 = arith.addf %118, %121 : vector<4x128xf32>
    %c12_117 = arith.constant 12 : index
    %c0_118 = arith.constant 0 : index
    %123 = tpu.strided_load %arg19[%c12_117, %c0_118] {strides = array<i32: 2, 1>} : memref<20x128xf32, #tpu.memory_space<vmem>>, vector<4x128xf32>
    %124 = arith.truncf %123 : vector<4x128xf32> to vector<4x128xbf16>
    %cst_119 = arith.constant dense<0.000000e+00> : vector<4x128xf32>
    %125 = tpu.matmul %124, %98, %cst_119 {dimension_numbers = #tpu.dot_dimension_numbers<[1], [0], [0], [1], [0, 0, 1, 1], [], []>} : vector<4x128xbf16>, vector<128x128xbf16>, vector<4x128xf32> -> vector<4x128xf32>
    %126 = arith.addf %122, %125 : vector<4x128xf32>
    %127 = vector.broadcast %99 : vector<1x128xf32> to vector<4x128xf32>
    %128 = arith.addf %126, %127 : vector<4x128xf32>
    %cst_120 = arith.constant 0.000000e+00 : f32
    %129 = vector.broadcast %cst_120 : f32 to vector<4x128xf32>
    %130 = arith.maximumf %128, %129 : vector<4x128xf32>
    %c7 = arith.constant 7 : index
    %c0_121 = arith.constant 0 : index
    %131 = vector.load %arg20[%c7, %c0_121] : memref<12x128xf32, #tpu.memory_space<vmem>>, vector<4x128xf32>
    tpu.vector_store %arg20[%c7, %c0_121], %130 {strides = array<i32>} : memref<12x128xf32, #tpu.memory_space<vmem>>, vector<4x128xf32>,
    %c0_122 = arith.constant 0 : index
    %c0_123 = arith.constant 0 : index
    %132 = vector.load %arg7[%c0_122, %c0_123] : memref<384x128xbf16, #tpu.memory_space<vmem>>, vector<128x128xbf16>
    %c128_124 = arith.constant 128 : index
    %c0_125 = arith.constant 0 : index
    %133 = vector.load %arg7[%c128_124, %c0_125] : memref<384x128xbf16, #tpu.memory_space<vmem>>, vector<128x128xbf16>
    %c256_126 = arith.constant 256 : index
    %c0_127 = arith.constant 0 : index
    %134 = vector.load %arg7[%c256_126, %c0_127] : memref<384x128xbf16, #tpu.memory_space<vmem>>, vector<128x128xbf16>
    %c0_128 = arith.constant 0 : index
    %c0_129 = arith.constant 0 : index
    %135 = vector.load %arg8[%c0_128, %c0_129] : memref<1x128xf32, #tpu.memory_space<vmem>>, vector<1x128xf32>
    %c0_130 = arith.constant 0 : index
    %c0_131 = arith.constant 0 : index
    %136 = tpu.strided_load %arg20[%c0_130, %c0_131] {strides = array<i32: 2, 1>} : memref<12x128xf32, #tpu.memory_space<vmem>>, vector<2x128xf32>
    %137 = arith.truncf %136 : vector<2x128xf32> to vector<2x128xbf16>
    %cst_132 = arith.constant dense<0.000000e+00> : vector<2x128xf32>
    %138 = tpu.matmul %137, %132, %cst_132 {dimension_numbers = #tpu.dot_dimension_numbers<[1], [0], [0], [1], [0, 0, 1, 1], [], []>} : vector<2x128xbf16>, vector<128x128xbf16>, vector<2x128xf32> -> vector<2x128xf32>
    %c1_133 = arith.constant 1 : index
    %c0_134 = arith.constant 0 : index
    %139 = tpu.strided_load %arg20[%c1_133, %c0_134] {strides = array<i32: 2, 1>} : memref<12x128xf32, #tpu.memory_space<vmem>>, vector<2x128xf32>
    %140 = arith.truncf %139 : vector<2x128xf32> to vector<2x128xbf16>
    %cst_135 = arith.constant dense<0.000000e+00> : vector<2x128xf32>
    %141 = tpu.matmul %140, %133, %cst_135 {dimension_numbers = #tpu.dot_dimension_numbers<[1], [0], [0], [1], [0, 0, 1, 1], [], []>} : vector<2x128xbf16>, vector<128x128xbf16>, vector<2x128xf32> -> vector<2x128xf32>
    %142 = arith.addf %138, %141 : vector<2x128xf32>
    %c2_136 = arith.constant 2 : index
    %c0_137 = arith.constant 0 : index
    %143 = tpu.strided_load %arg20[%c2_136, %c0_137] {strides = array<i32: 2, 1>} : memref<12x128xf32, #tpu.memory_space<vmem>>, vector<2x128xf32>
    %144 = arith.truncf %143 : vector<2x128xf32> to vector<2x128xbf16>
    %cst_138 = arith.constant dense<0.000000e+00> : vector<2x128xf32>
    %145 = tpu.matmul %144, %134, %cst_138 {dimension_numbers = #tpu.dot_dimension_numbers<[1], [0], [0], [1], [0, 0, 1, 1], [], []>} : vector<2x128xbf16>, vector<128x128xbf16>, vector<2x128xf32> -> vector<2x128xf32>
    %146 = arith.addf %142, %145 : vector<2x128xf32>
    %147 = vector.broadcast %135 : vector<1x128xf32> to vector<2x128xf32>
    %148 = arith.addf %146, %147 : vector<2x128xf32>
    %cst_139 = arith.constant 0.000000e+00 : f32
    %149 = vector.broadcast %cst_139 : f32 to vector<2x128xf32>
    %150 = arith.maximumf %148, %149 : vector<2x128xf32>
    %c0_140 = arith.constant 0 : index
    %c0_141 = arith.constant 0 : index
    %151 = vector.load %arg21[%c0_140, %c0_141] : memref<4x128xf32, #tpu.memory_space<vmem>>, vector<2x128xf32>
    tpu.vector_store %arg21[%c0_140, %c0_141], %150 {strides = array<i32>} : memref<4x128xf32, #tpu.memory_space<vmem>>, vector<2x128xf32>,
    %c6_142 = arith.constant 6 : index
    %c0_143 = arith.constant 0 : index
    %152 = tpu.strided_load %arg20[%c6_142, %c0_143] {strides = array<i32: 2, 1>} : memref<12x128xf32, #tpu.memory_space<vmem>>, vector<2x128xf32>
    %153 = arith.truncf %152 : vector<2x128xf32> to vector<2x128xbf16>
    %cst_144 = arith.constant dense<0.000000e+00> : vector<2x128xf32>
    %154 = tpu.matmul %153, %132, %cst_144 {dimension_numbers = #tpu.dot_dimension_numbers<[1], [0], [0], [1], [0, 0, 1, 1], [], []>} : vector<2x128xbf16>, vector<128x128xbf16>, vector<2x128xf32> -> vector<2x128xf32>
    %c7_145 = arith.constant 7 : index
    %c0_146 = arith.constant 0 : index
    %155 = tpu.strided_load %arg20[%c7_145, %c0_146] {strides = array<i32: 2, 1>} : memref<12x128xf32, #tpu.memory_space<vmem>>, vector<2x128xf32>
    %156 = arith.truncf %155 : vector<2x128xf32> to vector<2x128xbf16>
    %cst_147 = arith.constant dense<0.000000e+00> : vector<2x128xf32>
    %157 = tpu.matmul %156, %133, %cst_147 {dimension_numbers = #tpu.dot_dimension_numbers<[1], [0], [0], [1], [0, 0, 1, 1], [], []>} : vector<2x128xbf16>, vector<128x128xbf16>, vector<2x128xf32> -> vector<2x128xf32>
    %158 = arith.addf %154, %157 : vector<2x128xf32>
    %c8 = arith.constant 8 : index
    %c0_148 = arith.constant 0 : index
    %159 = tpu.strided_load %arg20[%c8, %c0_148] {strides = array<i32: 2, 1>} : memref<12x128xf32, #tpu.memory_space<vmem>>, vector<2x128xf32>
    %160 = arith.truncf %159 : vector<2x128xf32> to vector<2x128xbf16>
    %cst_149 = arith.constant dense<0.000000e+00> : vector<2x128xf32>
    %161 = tpu.matmul %160, %134, %cst_149 {dimension_numbers = #tpu.dot_dimension_numbers<[1], [0], [0], [1], [0, 0, 1, 1], [], []>} : vector<2x128xbf16>, vector<128x128xbf16>, vector<2x128xf32> -> vector<2x128xf32>
    %162 = arith.addf %158, %161 : vector<2x128xf32>
    %163 = vector.broadcast %135 : vector<1x128xf32> to vector<2x128xf32>
    %164 = arith.addf %162, %163 : vector<2x128xf32>
    %cst_150 = arith.constant 0.000000e+00 : f32
    %165 = vector.broadcast %cst_150 : f32 to vector<2x128xf32>
    %166 = arith.maximumf %164, %165 : vector<2x128xf32>
    %c2_151 = arith.constant 2 : index
    %c0_152 = arith.constant 0 : index
    %167 = vector.load %arg21[%c2_151, %c0_152] : memref<4x128xf32, #tpu.memory_space<vmem>>, vector<2x128xf32>
    tpu.vector_store %arg21[%c2_151, %c0_152], %166 {strides = array<i32>} : memref<4x128xf32, #tpu.memory_space<vmem>>, vector<2x128xf32>,
    %c0_153 = arith.constant 0 : index
    %c0_154 = arith.constant 0 : index
    %168 = vector.load %arg9[%c0_153, %c0_154] : memref<2x4xf32, #tpu.memory_space<vmem>>, vector<2x4xf32>
    %c0_155 = arith.constant 0 : index
    %c0_156 = arith.constant 0 : index
    %169 = vector.load %arg21[%c0_155, %c0_156] : memref<4x128xf32, #tpu.memory_space<vmem>>, vector<4x128xf32>
    %cst_157 = arith.constant dense<0.000000e+00> : vector<2x128xf32>
    %170 = tpu.matmul %168, %169, %cst_157 {dimension_numbers = #tpu.dot_dimension_numbers<[1], [0], [0], [1], [0, 0, 1, 1], [], []>} : vector<2x4xf32>, vector<4x128xf32>, vector<2x128xf32> -> vector<2x128xf32>
    %c0_158 = arith.constant 0 : index
    %c0_159 = arith.constant 0 : index
    %171 = vector.load %arg10[%c0_158, %c0_159] : memref<128x128xf32, #tpu.memory_space<vmem>>, vector<128x128xf32>
    %cst_160 = arith.constant dense<0.000000e+00> : vector<2x128xf32>
    %172 = tpu.matmul %170, %171, %cst_160 {dimension_numbers = #tpu.dot_dimension_numbers<[1], [0], [0], [1], [0, 0, 1, 1], [], []>} : vector<2x128xf32>, vector<128x128xf32>, vector<2x128xf32> -> vector<2x128xf32>
    %c0_161 = arith.constant 0 : index
    %c0_162 = arith.constant 0 : index
    %173 = vector.load %arg11[%c0_161, %c0_162] : memref<1x128xf32, #tpu.memory_space<vmem>>, vector<1x128xf32>
    %174 = vector.broadcast %173 : vector<1x128xf32> to vector<2x128xf32>
    %175 = arith.addf %172, %174 : vector<2x128xf32>
    %c0_163 = arith.constant 0 : index
    %c0_164 = arith.constant 0 : index
    %176 = vector.load %arg12[%c0_163, %c0_164] : memref<128x512xf32, #tpu.memory_space<vmem>>, vector<128x512xf32>
    %cst_165 = arith.constant dense<0.000000e+00> : vector<2x512xf32>
    %177 = tpu.matmul %175, %176, %cst_165 {dimension_numbers = #tpu.dot_dimension_numbers<[1], [0], [0], [1], [0, 0, 1, 1], [], []>} : vector<2x128xf32>, vector<128x512xf32>, vector<2x512xf32> -> vector<2x512xf32>
    %c0_166 = arith.constant 0 : index
    %c0_167 = arith.constant 0 : index
    %178 = vector.load %arg13[%c0_166, %c0_167] : memref<1x512xf32, #tpu.memory_space<vmem>>, vector<1x512xf32>
    %179 = vector.broadcast %178 : vector<1x512xf32> to vector<2x512xf32>
    %180 = arith.addf %177, %179 : vector<2x512xf32>
    %c0_168 = arith.constant 0 : index
    %c0_169 = arith.constant 0 : index
    %181 = vector.load %arg14[%c0_168, %c0_169] : memref<512x8xf32, #tpu.memory_space<vmem>>, vector<512x8xf32>
    %cst_170 = arith.constant dense<0.000000e+00> : vector<2x8xf32>
    %182 = tpu.matmul %180, %181, %cst_170 {dimension_numbers = #tpu.dot_dimension_numbers<[1], [0], [0], [1], [0, 0, 1, 1], [], []>} : vector<2x512xf32>, vector<512x8xf32>, vector<2x8xf32> -> vector<2x8xf32>
    %c0_171 = arith.constant 0 : index
    %c0_172 = arith.constant 0 : index
    %183 = vector.load %arg15[%c0_171, %c0_172] : memref<1x8xf32, #tpu.memory_space<vmem>>, vector<1x8xf32>
    %184 = vector.broadcast %183 : vector<1x8xf32> to vector<2x8xf32>
    %185 = arith.addf %182, %184 : vector<2x8xf32>
    %c0_173 = arith.constant 0 : index
    %c0_174 = arith.constant 0 : index
    %186 = vector.load %arg16[%c0_173, %c0_174] : memref<2x8xf32, #tpu.memory_space<vmem>>, vector<2x8xf32>
    tpu.vector_store %arg16[%c0_173, %c0_174], %185 {strides = array<i32>} : memref<2x8xf32, #tpu.memory_space<vmem>>, vector<2x8xf32>,
    return
  }
}

</mosaic_0001>

<bundles_post_ra>
// kernel: forward.1
= control target key start
LH: loop header
LB: loop body
LE: loop exit
PB: predicated region body
PF: predicated region fallthrough
CT: control target
= control target key end

     0   :  { %s5000_s0 = inlined_call_operand.vmem [shape: f32[32,48], index: 0, kind: input, shape index: {}]   ;;  %s5001_s1 = inlined_call_operand.vmem [shape: bf16[384,128], index: 1, kind: input, shape index: {}]   ;;  %s5002_s2 = inlined_call_operand.vmem [shape: f32[1,128], index: 2, kind: input, shape index: {}]   ;;  %s5003_s3 = inlined_call_operand.vmem [shape: bf16[384,128], index: 3, kind: input, shape index: {}]   ;;  %s5004_s4 = inlined_call_operand.vmem [shape: f32[1,128], index: 4, kind: input, shape index: {}]   ;;  %s5005_s5 = inlined_call_operand.hbm [shape: bf16[384,128], index: 5, kind: input, shape index: {}]   ;;  %s5006_s6 = inlined_call_operand.vmem [shape: f32[1,128], index: 6, kind: input, shape index: {}]   ;;  %s5007_s7 = inlined_call_operand.hbm [shape: bf16[384,128], index: 7, kind: input, shape index: {}]   ;;  %s5008_s8 = inlined_call_operand.vmem [shape: f32[1,128], index: 8, kind: input, shape index: {}]   ;;  %s5009_s9 = inlined_call_operand.vmem [shape: f32[2,4], index: 9, kind: input, shape index: {}]   ;;  %s5010_s10 = inlined_call_operand.hbm [shape: f32[128,128], index: 10, kind: input, shape index: {}]   ;;  %s5011_s11 = inlined_call_operand.vmem [shape: f32[1,128], index: 11, kind: input, shape index: {}]   ;;  %s5012_s12 = inlined_call_operand.vmem [shape: f32[128,512], index: 12, kind: input, shape index: {}]   ;;  %s5013_s13 = inlined_call_operand.vmem [shape: f32[1,512], index: 13, kind: input, shape index: {}]   ;;  %s5014_s14 = inlined_call_operand.vmem [shape: f32[512,8], index: 14, kind: input, shape index: {}]   ;;  %s5015_s15 = inlined_call_operand.vmem [shape: f32[1,8], index: 15, kind: input, shape index: {}]   ;;  %s5016_s16 = inlined_call_operand.hbm [shape: f32[2,8], index: 16, kind: output, shape index: {}]  }
   0x1   :  { %5018 = sst [smem:[#allocation17_spill]] %s5000_s0 }
   0x2   :  { %21 = vsyncpa [#allocation8], 0 }
   0x3   :  { %22 = vsyncpa [#allocation11], 0 }
   0x4   :  { %23 = vsyncpa [#allocation9], 0  ;;  %s3728_s21 = smov [#allocation10]   ;;  %s3729_s23 = smov [#allocation7]  }
   0x5   :  { %s53_s22 = sshll.u32 %s3728_s21, 4  ;;  %s39_s24 = sshll.u32 %s3729_s23, 4  ;;  %s54_s22 = int_to_ptr.vmem [resolvable:$true] %s53_s22  ;;  %s40_s24 = int_to_ptr.vmem [resolvable:$true] %s39_s24 }
   0x6   :  { %s3650_s25 = scalar_lea.vmem %s54_s22, 3072  ;;  %p3655_p1 = scmp.lt.s32.totalorder %s54_s22, %s54_s22 }
   0x7   :  { %p3651_p0 = scmp.ne.s32.totalorder %s54_s22, %s3650_s25  ;;  %p3656_p2 = scmp.lt.s32.totalorder %s3650_s25, %s3650_s25 }
   0x9   :  { %p3657_p3 = por %p3656_p2, %p3655_p1 }
   0xb   :  { %p3658_p4 = pnand %p3657_p3, %p3651_p0 }
   0xd   :  { %3661 = shalt.err (!%p3658_p4)
}
   0xe   :  { %s3730_s26 = smov 64   ;;  %s3731_s27 = smov 4  }
   0xf   :  { %59 = dma.hbm_to_vmem [thread:$0]  %s5007_s7, 3072, %s54_s22, [#allocation11], %s3730_s26, %s3730_s26, %s3731_s27  }
  0x10   :  { %s3670_s30 = scalar_lea.vmem %s40_s24, 3072  ;;  %p3675_p6 = scmp.lt.s32.totalorder %s40_s24, %s40_s24 }
  0x11   :  { %p3671_p5 = scmp.ne.s32.totalorder %s40_s24, %s3670_s30  ;;  %p3676_p7 = scmp.lt.s32.totalorder %s3670_s30, %s3670_s30 }
  0x13   :  { %p3677_p8 = por %p3676_p7, %p3675_p6 }
  0x15   :  { %p3678_p9 = pnand %p3677_p8, %p3671_p5 }
  0x17   :  { %3681 = shalt.err (!%p3678_p9)
}
  0x18   :  { %45 = dma.hbm_to_vmem [thread:$0]  %s5005_s5, 3072, %s40_s24, [#allocation8], %s3730_s26, %s3730_s26, %s3731_s27  }
  0x19   :  { %s3732_s18 = smov [#allocation12]  }
  0x1a   :  { %s69_s19 = sshll.u32 %s3732_s18, 4  ;;  %s70_s19 = int_to_ptr.vmem [resolvable:$true] %s69_s19 }
  0x1b   :  { %s3690_s20 = scalar_lea.vmem %s70_s19, 2048  ;;  %p3695_p11 = scmp.lt.s32.totalorder %s70_s19, %s70_s19 }
  0x1c   :  { %p3691_p10 = scmp.ne.s32.totalorder %s70_s19, %s3690_s20  ;;  %p3696_p12 = scmp.lt.s32.totalorder %s3690_s20, %s3690_s20 }
  0x1e   :  { %p3697_p13 = por %p3696_p12, %p3695_p11 }
  0x20   :  { %p3698_p0 = pnand %p3697_p13, %p3691_p10 }
  0x22   :  { %3701 = shalt.err (!%p3698_p0)
}
  0x23   :  { %s3733_s7 = smov 128   ;;  %s3734_s21 = smov 8  }
  0x24   :  { %75 = dma.hbm_to_vmem [thread:$0]  %s5010_s10, 2048, %s70_s19, [#allocation11], %s3733_s7, %s3733_s7, %s3734_s21  }
  0x25   :  { %3722 = dma.done.wait [#allocation8], 3072  }
  0x26   :  { %3723 = vsyncadd [#allocation8], 4294964224 }
  0x27   :  { %3724 = dma.done.wait [#allocation11], 5120  }
  0x28   :  { %3725 = vsyncadd [#allocation11], 4294962176  ;;  %vm112_vm0 = vcmask 1047936   ;;  %v3735_v0 = vmov 0.0   ;;  %vm3736_vm1 = vmmov 0   ;;  %v3859_v1 = vld [vmem:[%s5001_s1 + $0x78] sm:$0xff]  }
  0x29   :  { %96 = vst [vmem:[#allocation2] sm:$0x1] %v3735_v0  ;;  %98 = vst [vmem:[#allocation2 + $0x12] sm:$0x1] %v3735_v0  ;;  %3016 = vmatprep.subr.bf16.mxu0 %v3735_v0  ;;  %3036 = vmatprep.subr.bf16.mxu1 %v3735_v0  ;;  %v3864_v2 = vld [vmem:[%s5001_s1 + $0x38] sm:$0xff]   ;;  %v3870_v3 = vld [vmem:[%s5001_s1 + $0x70] sm:$0xff]  }
  0x2a   :  { %100 = vst [vmem:[#allocation3] sm:$0x1] %v3735_v0  ;;  %101 = vst [vmem:[#allocation3 + $0x9] sm:$0x1] %v3735_v0  ;;  %3032 = vmatprep.mubr.msk.bf16.mxu0 %vm3736_vm1, %v3735_v0  ;;  %3052 = vmatprep.mubr.msk.bf16.mxu1 %vm3736_vm1, %v3735_v0  ;;  %v3877_v4 = vld [vmem:[%s5001_s1 + $0x30] sm:$0xff]   ;;  %v3884_v5 = vld [vmem:[%s5001_s1 + $0x68] sm:$0xff]  }
  0x2b   :  { %102 = vst [vmem:[#allocation3 + $0xa] sm:$0x1] %v3735_v0  ;;  %103 = vst [vmem:[#allocation3 + $0x13] sm:$0x1] %v3735_v0  ;;  %3017 = vmatpush3.bf16.msra.mxu0 %v3859_v1  ;;  %3037 = vmatpush3.bf16.msra.mxu1 %v3864_v2  ;;  %v3891_v6 = vld [vmem:[%s5001_s1 + $0x28] sm:$0xff]   ;;  %v3898_v7 = vld [vmem:[%s5001_s1 + $0x60] sm:$0xff]  }
  0x2c   :  { %104 = vst [vmem:[#allocation4] sm:$0x1] %v3735_v0  ;;  %106 = vst [vmem:[#allocation4 + $0xa] sm:$0x1] %v3735_v0  ;;  %3018 = vmatprep.subr.bf16.mxu0 %v3735_v0  ;;  %3038 = vmatprep.subr.bf16.mxu1 %v3735_v0  ;;  %v3905_v8 = vld [vmem:[%s5001_s1 + $0x20] sm:$0xff]   ;;  %v3912_v9 = vld [vmem:[%s5001_s1 + $0x58] sm:$0xff]  }
  0x2d   :  { %108 = vst [vmem:[#allocation5] sm:$0x1] %v3735_v0  ;;  %110 = vst [vmem:[#allocation5 + $0x6] sm:$0x1] %v3735_v0  ;;  %vm117_vm2 = vcmask 392192   ;;  %v3919_v10 = vld [vmem:[%s5001_s1 + $0x18] sm:$0xff]  }
  0x2e   :  { %113 = vst.msk [vmem:[#allocation2 + $0x1] sm:$0xff] %vm112_vm0, %v3735_v0  ;;  %114 = vst.msk [vmem:[#allocation2 + $0x9] sm:$0xff] %vm112_vm0, %v3735_v0  ;;  %s5019_s26 = sld [smem:[#allocation17_spill]]  ;;  %v3556_v13 = vld [vmem:[%s5001_s1 + $0x50] sm:$0xff]   ;;  %v3558_v15 = vld [vmem:[%s5001_s1 + $0x48] sm:$0xff]   ;;  %vm1983_vm3 = vcmask 1043456  }
  0x2f   :  { %120 = vst.msk [vmem:[#allocation2 + $0x13] sm:$0xff] %vm112_vm0, %v3735_v0  ;;  %121 = vst.msk [vmem:[#allocation2 + $0x1b] sm:$0xff] %vm112_vm0, %v3735_v0  ;;  %3019 = vmatpush3.bf16.msra.mxu0 %v3870_v3  ;;  %3039 = vmatpush3.bf16.msra.mxu1 %v3877_v4  ;;  %v3939_v14 = vld [vmem:[%s5001_s1 + $0x10] sm:$0xff]   ;;  %v3950_v16 = vld [vmem:[%s5001_s1 + $0x8] sm:$0xff]   ;;  %vm1979_vm4 = vcmask 31744   ;;  %s3737_s23 = smov [#allocation13]  }
  0x30   :  { %3020 = vmatprep.subr.bf16.mxu0 %v3735_v0  ;;  %3040 = vmatprep.subr.bf16.mxu1 %v3735_v0  ;;  %v3956_v17 = vld [vmem:[%s5001_s1 + $0x40] sm:$0xff]   ;;  %v3562_v23 = vld [vmem:[%s5001_s1 + $0xb8] sm:$0xff]   ;;  %v3563_v26 = vld [vmem:[%s5001_s1 + $0xb0] sm:$0xff]   ;;  %s2597_s5 = sshll.u32 %s3737_s23, 4  ;;  %vm2589_vm5 = vcmask 58368   ;;  %s2598_s5 = int_to_ptr.vmem [resolvable:$true] %s2597_s5 }
  0x31   :  { %v3961_v18 = vld [vmem:[%s5001_s1] sm:$0xff]   ;;  %v3564_v27 = vld [vmem:[%s5001_s1 + $0xa8] sm:$0xff]   ;;  %v3566_v29 = vld [vmem:[%s5001_s1 + $0x98] sm:$0xff]   ;;  %p3707_p2 = scmp.lt.s32.totalorder %s2598_s5, %s2598_s5 }
  0x32   :  { %v3565_v28 = vld [vmem:[%s5001_s1 + $0xa0] sm:$0xff]   ;;  %v3567_v30 = vld [vmem:[%s5001_s1 + $0x90] sm:$0xff]   ;;  %v3568_v31 = vld [vmem:[%s5001_s1 + $0x88] sm:$0xff]  }
  0x33   :  { %3021 = vmatpush3.bf16.msra.mxu0 %v3884_v5  ;;  %3041 = vmatpush3.bf16.msra.mxu1 %v3891_v6  ;;  %v3569_v32 = vld [vmem:[%s5001_s1 + $0x80] sm:$0xff]   ;;  %v4063_v41 = vld [vmem:[%s5003_s3 + $0x78] sm:$0xff]   ;;  %v4075_v43 = vld [vmem:[%s5003_s3 + $0x70] sm:$0xff]  }
  0x34   :  { %3022 = vmatprep.subr.bf16.mxu0 %v3735_v0  ;;  %3042 = vmatprep.subr.bf16.mxu1 %v3735_v0  ;;  %v115_v11 = vld [vmem:[%s5019_s26] sm:$0xff]  ;;  %v116_v12 = vld [vmem:[%s5019_s26 + $0x8] sm:$0xff]  ;;  %v122_v21 = vld [vmem:[%s5019_s26 + $0x10] sm:$0xff] }
  0x35   :  { %118 = vst.msk [vmem:[#allocation2 + $0x1] sm:$0xff] %vm117_vm2, %v115_v11  ;;  %119 = vst.msk [vmem:[#allocation2 + $0x9] sm:$0xff] %vm117_vm2, %v116_v12  ;;  %v123_v22 = vld [vmem:[%s5019_s26 + $0x18] sm:$0xff]  ;;  %v4080_v44 = vld [vmem:[%s5003_s3 + $0x30] sm:$0xff]  }
  0x36   :  { %124 = vst.msk [vmem:[#allocation2 + $0x13] sm:$0xff] %vm117_vm2, %v122_v21  ;;  %125 = vst.msk [vmem:[#allocation2 + $0x1b] sm:$0xff] %vm117_vm2, %v123_v22  ;;  %v4068_v42 = vld [vmem:[%s5003_s3 + $0x38] sm:$0xff]   ;;  %v4089_v45 = vld [vmem:[%s5003_s3 + $0x68] sm:$0xff]  }
  0x37   :  { %3023 = vmatpush3.bf16.msra.mxu0 %v3898_v7  ;;  %3043 = vmatpush3.bf16.msra.mxu1 %v3905_v8  ;;  %v4094_v46 = vld [vmem:[%s5003_s3 + $0x28] sm:$0xff]   ;;  %v4103_v47 = vld [vmem:[%s5003_s3 + $0x60] sm:$0xff]   ;;  %v4119_v49 = vld [vmem:[%s5003_s3 + $0x58] sm:$0xff]  }
  0x38   :  { %3024 = vmatprep.subr.bf16.mxu0 %v3735_v0  ;;  %3044 = vmatprep.subr.bf16.mxu1 %v3735_v0  ;;  %v4108_v48 = vld [vmem:[%s5003_s3 + $0x20] sm:$0xff]   ;;  %v4126_v50 = vld [vmem:[%s5003_s3 + $0x50] sm:$0xff]   ;;  %v4133_v51 = vld [vmem:[%s5003_s3 + $0x18] sm:$0xff]  }
  0x39   :  { %v4138_v52 = vld [vmem:[%s5003_s3 + $0x48] sm:$0xff]   ;;  %v4147_v53 = vld [vmem:[%s5003_s3 + $0x10] sm:$0xff]   ;;  %v4152_v54 = vld [vmem:[%s5003_s3 + $0x40] sm:$0xff]  }
  0x3a   :  { %v4161_v55 = vld [vmem:[%s5003_s3 + $0x8] sm:$0xff]   ;;  %v4167_v56 = vld [vmem:[%s5003_s3] sm:$0xff]   ;;  %v4212_v22 = vld [vmem:[%s5003_s3 + $0x98] sm:$0xff]  }
  0x3b   :  { %3025 = vmatpush3.bf16.msra.mxu0 %v3912_v9  ;;  %3045 = vmatpush3.bf16.msra.mxu1 %v3919_v10  ;;  %v4201_v21 = vld [vmem:[%s5003_s3 + $0xa0] sm:$0xff]  }
  0x3c   :  { %3026 = vmatprep.subr.bf16.mxu0 %v3735_v0  ;;  %3046 = vmatprep.subr.bf16.mxu1 %v3735_v0  ;;  %v178_v19 = vld [vmem:[#allocation2 + $0x1] ss:$2 sm:$0xff]  ;;  %v175_v20 = vld [vmem:[#allocation2] ss:$2 sm:$0xff] }
  0x3d   :  { %v179_v24 = vpack.c.bf16 %v178_v19, %v178_v19  ;;  %v176_v25 = vpack.c.bf16 %v175_v20, %v175_v20  ;;  %v357_v33 = vld [vmem:[#allocation2 + $0x2] ss:$2 sm:$0xff]  ;;  %v461_v34 = vld [vmem:[#allocation2 + $0x13] ss:$2 sm:$0xff]  ;;  %v458_v37 = vld [vmem:[#allocation2 + $0x12] ss:$2 sm:$0xff] }
  0x3e   :  { %v358_v35 = vpack.c.bf16 %v357_v33, %v357_v33  ;;  %v462_v36 = vpack.c.bf16 %v461_v34, %v461_v34  ;;  %v544_v38 = vld [vmem:[#allocation2 + $0x14] ss:$2 sm:$0xff]  ;;  %v459_v39 = vpack.c.bf16 %v458_v37, %v458_v37  ;;  %v4193_v19 = vld [vmem:[%s5003_s3 + $0xa8] sm:$0xff]  }
  0x3f   :  { %3027 = vmatpush3.bf16.msra.mxu0 %v3556_v13  ;;  %3047 = vmatpush3.bf16.msra.mxu1 %v3939_v14  ;;  %v545_v40 = vpack.c.bf16 %v544_v38, %v544_v38 }
  0x40   :  { %3028 = vmatprep.subr.bf16.mxu0 %v3735_v0  ;;  %3048 = vmatprep.subr.bf16.mxu1 %v3735_v0 }
  0x43   :  { %3029 = vmatpush3.bf16.msra.mxu0 %v3558_v15  ;;  %3049 = vmatpush3.bf16.msra.mxu1 %v3950_v16 }
  0x44   :  { %3030 = vmatprep.subr.bf16.mxu0 %v3735_v0  ;;  %3050 = vmatprep.subr.bf16.mxu1 %v3735_v0 }
  0x47   :  { %3031 = vmatpush3.bf16.msra.mxu0 %v3956_v17  ;;  %3051 = vmatpush3.bf16.msra.mxu1 %v3961_v18 }
  0x48   :  { %3056 = vmatprep.subr.bf16.mxu0 %v3735_v0  ;;  %3076 = vmatprep.subr.bf16.mxu1 %v3735_v0 }
  0x4a   :  { %3033 = vmatmul.mubr.bf16.vlgmr.msra.gmra.mxu0 %v179_v24  ;;  %3053 = vmatmul.mubr.bf16.vlgmr.msra.gmra.mxu1 %v176_v25  ;;  %v4230_v24 = vld [vmem:[%s5003_s3 + $0x88] sm:$0xff]  }
  0x4b   :  { %3057 = vmatpush3.bf16.msra.mxu0 %v3562_v23  ;;  %3077 = vmatpush3.bf16.msra.mxu1 %v3859_v1 }
  0x4c   :  { %3058 = vmatprep.subr.bf16.mxu0 %v3735_v0  ;;  %3078 = vmatprep.subr.bf16.mxu1 %v3735_v0 }
  0x4d   :  { %3072 = vmatprep.mubr.msk.bf16.mxu0 %vm3736_vm1, %v3735_v0  ;;  %3092 = vmatprep.mubr.msk.bf16.mxu1 %vm3736_vm1, %v3735_v0 }
  0x4f   :  { %3059 = vmatpush3.bf16.msra.mxu0 %v3563_v26  ;;  %3079 = vmatpush3.bf16.msra.mxu1 %v3870_v3  ;;  %v2631_v3 = vld [vmem:[%s5002_s2] ss:$0 sm:$0xff]  ;;  %s3702_s2 = scalar_lea.vmem %s2598_s5, 32 }
  0x50   :  { %3060 = vmatprep.subr.bf16.mxu0 %v3735_v0  ;;  %3080 = vmatprep.subr.bf16.mxu1 %v3735_v0  ;;  %p3703_p1 = scmp.ne.s32.totalorder %s2598_s5, %s3702_s2  ;;  %p3708_p3 = scmp.lt.s32.totalorder %s3702_s2, %s3702_s2 }
  0x52   :  { %p3709_p4 = por %p3708_p3, %p3707_p2 }
  0x53   :  { %3061 = vmatpush3.bf16.msra.mxu0 %v3564_v27  ;;  %3081 = vmatpush3.bf16.msra.mxu1 %v3884_v5 }
  0x54   :  { %3062 = vmatprep.subr.bf16.mxu0 %v3735_v0  ;;  %3082 = vmatprep.subr.bf16.mxu1 %v3735_v0  ;;  %p3710_p5 = pnand %p3709_p4, %p3703_p1 }
  0x57   :  { %3063 = vmatpush3.bf16.msra.mxu0 %v3565_v28  ;;  %3083 = vmatpush3.bf16.msra.mxu1 %v3898_v7 }
  0x58   :  { %3064 = vmatprep.subr.bf16.mxu0 %v3735_v0  ;;  %3084 = vmatprep.subr.bf16.mxu1 %v3735_v0 }
  0x5b   :  { %3065 = vmatpush3.bf16.msra.mxu0 %v3566_v29  ;;  %3085 = vmatpush3.bf16.msra.mxu1 %v3912_v9 }
  0x5c   :  { %3066 = vmatprep.subr.bf16.mxu0 %v3735_v0  ;;  %3086 = vmatprep.subr.bf16.mxu1 %v3735_v0 }
  0x5f   :  { %3067 = vmatpush3.bf16.msra.mxu0 %v3567_v30  ;;  %3087 = vmatpush3.bf16.msra.mxu1 %v3556_v13 }
  0x60   :  { %3068 = vmatprep.subr.bf16.mxu0 %v3735_v0  ;;  %3088 = vmatprep.subr.bf16.mxu1 %v3735_v0 }
  0x63   :  { %3069 = vmatpush3.bf16.msra.mxu0 %v3568_v31  ;;  %3089 = vmatpush3.bf16.msra.mxu1 %v3558_v15 }
  0x64   :  { %3070 = vmatprep.subr.bf16.mxu0 %v3735_v0  ;;  %3090 = vmatprep.subr.bf16.mxu1 %v3735_v0 }
  0x67   :  { %3071 = vmatpush3.bf16.msra.mxu0 %v3569_v32  ;;  %3091 = vmatpush3.bf16.msra.mxu1 %v3956_v17  ;;  %v4184_v17 = vld [vmem:[%s5003_s3 + $0xb0] sm:$0xff]  }
  0x68   :  { %3096 = vmatprep.subr.bf16.mxu0 %v3735_v0  ;;  %3116 = vmatprep.subr.bf16.mxu1 %v3735_v0 }
  0x6a   :  { %3073 = vmatmul.mubr.bf16.vlgmr.msra.gmra.mxu0 %v358_v35  ;;  %3093 = vmatmul.mubr.bf16.vlgmr.msra.gmra.mxu1 %v462_v36 }
  0x6b   :  { %3097 = vmatpush3.bf16.msra.mxu0 %v3864_v2  ;;  %3117 = vmatpush3.bf16.msra.mxu1 %v3562_v23  ;;  %v4221_v23 = vld [vmem:[%s5003_s3 + $0x90] sm:$0xff]  }
  0x6c   :  { %3098 = vmatprep.subr.bf16.mxu0 %v3735_v0  ;;  %3118 = vmatprep.subr.bf16.mxu1 %v3735_v0 }
  0x6d   :  { %3112 = vmatprep.mubr.msk.bf16.mxu0 %vm3736_vm1, %v3735_v0  ;;  %3132 = vmatprep.mubr.msk.bf16.mxu1 %vm3736_vm1, %v3735_v0 }
  0x6f   :  { %3099 = vmatpush3.bf16.msra.mxu0 %v3877_v4  ;;  %3119 = vmatpush3.bf16.msra.mxu1 %v3563_v26 }
  0x70   :  { %3100 = vmatprep.subr.bf16.mxu0 %v3735_v0  ;;  %3120 = vmatprep.subr.bf16.mxu1 %v3735_v0 }
  0x73   :  { %3101 = vmatpush3.bf16.msra.mxu0 %v3891_v6  ;;  %3121 = vmatpush3.bf16.msra.mxu1 %v3564_v27 }
  0x74   :  { %3102 = vmatprep.subr.bf16.mxu0 %v3735_v0  ;;  %3122 = vmatprep.subr.bf16.mxu1 %v3735_v0 }
  0x77   :  { %3103 = vmatpush3.bf16.msra.mxu0 %v3905_v8  ;;  %3123 = vmatpush3.bf16.msra.mxu1 %v3565_v28 }
  0x78   :  { %3104 = vmatprep.subr.bf16.mxu0 %v3735_v0  ;;  %3124 = vmatprep.subr.bf16.mxu1 %v3735_v0 }
  0x7b   :  { %3105 = vmatpush3.bf16.msra.mxu0 %v3919_v10  ;;  %3125 = vmatpush3.bf16.msra.mxu1 %v3566_v29  ;;  %v3593_v29 = vld [vmem:[%s5003_s3 + $0x80] sm:$0xff]  }
  0x7c   :  { %3106 = vmatprep.subr.bf16.mxu0 %v3735_v0  ;;  %3126 = vmatprep.subr.bf16.mxu1 %v3735_v0 }
  0x7f   :  { %3107 = vmatpush3.bf16.msra.mxu0 %v3939_v14  ;;  %3127 = vmatpush3.bf16.msra.mxu1 %v3567_v30  ;;  %v4178_v14 = vld [vmem:[%s5003_s3 + $0xb8] sm:$0xff]  }
  0x80   :  { %3108 = vmatprep.subr.bf16.mxu0 %v3735_v0  ;;  %3128 = vmatprep.subr.bf16.mxu1 %v3735_v0 }
  0x83   :  { %3109 = vmatpush3.bf16.msra.mxu0 %v3950_v16  ;;  %3129 = vmatpush3.bf16.msra.mxu1 %v3568_v31 }
  0x84   :  { %3110 = vmatprep.subr.bf16.mxu0 %v3735_v0  ;;  %3130 = vmatprep.subr.bf16.mxu1 %v3735_v0 }
  0x87   :  { %3111 = vmatpush3.bf16.msra.mxu0 %v3961_v18  ;;  %3131 = vmatpush3.bf16.msra.mxu1 %v3569_v32 }
  0x88   :  { %3136 = vmatprep.subr.bf16.mxu0 %v3735_v0  ;;  %3156 = vmatprep.subr.bf16.mxu1 %v3735_v0 }
  0x8a   :  { %3113 = vmatmul.mubr.bf16.vlgmr.msra.gmra.mxu0 %v459_v39  ;;  %3133 = vmatmul.mubr.bf16.vlgmr.msra.gmra.mxu1 %v545_v40 }
  0x8b   :  { %3152 = vmatprep.mubr.msk.bf16.mxu0 %vm3736_vm1, %v3735_v0  ;;  %3172 = vmatprep.mubr.msk.bf16.mxu1 %vm3736_vm1, %v3735_v0 }
  0x8c   :  { %3137 = vmatpush3.bf16.msra.mxu0 %v4063_v41  ;;  %3157 = vmatpush3.bf16.msra.mxu1 %v4068_v42 }
  0x8d   :  { %3138 = vmatprep.subr.bf16.mxu0 %v3735_v0  ;;  %3158 = vmatprep.subr.bf16.mxu1 %v3735_v0 }
  0x90   :  { %3139 = vmatpush3.bf16.msra.mxu0 %v4075_v43  ;;  %3159 = vmatpush3.bf16.msra.mxu1 %v4080_v44 }
  0x91   :  { %3140 = vmatprep.subr.bf16.mxu0 %v3735_v0  ;;  %3160 = vmatprep.subr.bf16.mxu1 %v3735_v0 }
  0x94   :  { %3141 = vmatpush3.bf16.msra.mxu0 %v4089_v45  ;;  %3161 = vmatpush3.bf16.msra.mxu1 %v4094_v46 }
  0x95   :  { %3142 = vmatprep.subr.bf16.mxu0 %v3735_v0  ;;  %3162 = vmatprep.subr.bf16.mxu1 %v3735_v0 }
  0x98   :  { %3143 = vmatpush3.bf16.msra.mxu0 %v4103_v47  ;;  %3163 = vmatpush3.bf16.msra.mxu1 %v4108_v48 }
  0x99   :  { %3144 = vmatprep.subr.bf16.mxu0 %v3735_v0  ;;  %3164 = vmatprep.subr.bf16.mxu1 %v3735_v0 }
  0x9c   :  { %3145 = vmatpush3.bf16.msra.mxu0 %v4119_v49  ;;  %3165 = vmatpush3.bf16.msra.mxu1 %v4133_v51 }
  0x9d   :  { %3146 = vmatprep.subr.bf16.mxu0 %v3735_v0  ;;  %3166 = vmatprep.subr.bf16.mxu1 %v3735_v0 }
  0xa0   :  { %3147 = vmatpush3.bf16.msra.mxu0 %v4126_v50  ;;  %3167 = vmatpush3.bf16.msra.mxu1 %v4147_v53 }
  0xa1   :  { %3148 = vmatprep.subr.bf16.mxu0 %v3735_v0  ;;  %3168 = vmatprep.subr.bf16.mxu1 %v3735_v0 }
  0xa4   :  { %3149 = vmatpush3.bf16.msra.mxu0 %v4138_v52  ;;  %3169 = vmatpush3.bf16.msra.mxu1 %v4161_v55 }
  0xa5   :  { %3150 = vmatprep.subr.bf16.mxu0 %v3735_v0  ;;  %3170 = vmatprep.subr.bf16.mxu1 %v3735_v0 }
  0xa8   :  { %3151 = vmatpush3.bf16.msra.mxu0 %v4152_v54  ;;  %3171 = vmatpush3.bf16.msra.mxu1 %v4167_v56 }
  0xa9   :  { %3176 = vmatprep.subr.bf16.mxu0 %v3735_v0  ;;  %3196 = vmatprep.subr.bf16.mxu1 %v3735_v0 }
 0x10a   :  { %v262_v57 = vpop.f32.mrf.mxu0  ;;  %v350_v58 = vpop.f32.mrf.mxu1 }
 0x10b   :  { %v351_v2 = vadd.f32 %v350_v58, %v262_v57  ;;  %v4334_v57 = vld [vmem:[#allocation7 + $0x48] sm:$0xff]  }
 0x10c   :  { %v3034_v59 = vpop.f32.mrf.mxu0  ;;  %v3054_v60 = vpop.f32.mrf.mxu1  ;;  %v4337_v58 = vld [vmem:[#allocation7 + $0x8] sm:$0xff]  }
 0x10d   :  { %v4342_v59 = vld [vmem:[#allocation7 + $0x40] sm:$0xff]  }
 0x10e   :  { %v265_v61 = vpop.f32.mrf.mxu0  ;;  %v353_v62 = vpop.f32.mrf.mxu1  ;;  %v4345_v60 = vld [vmem:[#allocation7] sm:$0xff]  }
 0x110   :  { %v3035_v63 = vpop.f32.mrf.mxu0  ;;  %v3055_v1 = vpop.f32.mrf.mxu1 }
 0x12a   :  { %v441_v4 = vpop.f32.mrf.mxu0  ;;  %v497_v6 = vpop.f32.mrf.mxu1 }
 0x12b   :  { %v447_v5 = vadd.f32 %v441_v4, %v351_v2 }
 0x12c   :  { %v3074_v7 = vpop.f32.mrf.mxu0  ;;  %v3094_v9 = vpop.f32.mrf.mxu1 }
 0x12d   :  { %v454_v8 = vadd.f32 %v2631_v3, %v447_v5  ;;  %v4354_v7 = vld [vmem:[%s5004_s4] ss:$0 sm:$0xff] }
 0x12e   :  { %v444_v10 = vpop.f32.mrf.mxu0  ;;  %v500_v12 = vpop.f32.mrf.mxu1 }
 0x12f   :  { %v455_v11 = vmax.f32 %v454_v8, 0.0 }
 0x130   :  { %v3075_v13 = vpop.f32.mrf.mxu0  ;;  %v3095_v15 = vpop.f32.mrf.mxu1 }
 0x131   :  { %456 = vst [vmem:[#allocation3 + $0x1] sm:$0xff] %v455_v11  ;;  %v642_v16 = vpack.c.bf16 %v455_v11, %v455_v11 }
 0x133   :  { %3153 = vmatmul.mubr.bf16.vlgmr.msra.gmra.mxu0 %v642_v16 }
 0x134   :  { %3177 = vmatpush3.bf16.msra.mxu0 %v4178_v14  ;;  %3192 = vmatprep.mubr.msk.bf16.mxu0 %vm3736_vm1, %v3735_v0 }
 0x135   :  { %3178 = vmatprep.subr.bf16.mxu0 %v3735_v0 }
 0x138   :  { %v639_v18 = vld [vmem:[#allocation3] sm:$0xff]  ;;  %3179 = vmatpush3.bf16.msra.mxu0 %v4184_v17 }
 0x139   :  { %v640_v20 = vpack.c.bf16 %v639_v18, %v639_v18  ;;  %3180 = vmatprep.subr.bf16.mxu0 %v3735_v0  ;;  %v819_v33 = vld [vmem:[#allocation3 + $0x2] sm:$0xff] }
 0x13a   :  { %v820_v39 = vpack.c.bf16 %v819_v33, %v819_v33  ;;  %v4357_v18 = vld [vmem:[#allocation7 + $0xb8] sm:$0xff]   ;;  %v3616_v33 = vld [vmem:[#allocation7 + $0x88] sm:$0xff]  }
 0x13b   :  { %3173 = vmatmul.mubr.bf16.vlgmr.msra.gmra.mxu1 %v640_v20 }
 0x13c   :  { %3197 = vmatpush3.bf16.msra.mxu1 %v4063_v41  ;;  %3181 = vmatpush3.bf16.msra.mxu0 %v4193_v19 }
 0x13d   :  { %3198 = vmatprep.subr.bf16.mxu1 %v3735_v0  ;;  %3182 = vmatprep.subr.bf16.mxu0 %v3735_v0 }
 0x13e   :  { %3212 = vmatprep.mubr.msk.bf16.mxu1 %vm3736_vm1, %v3735_v0 }
 0x140   :  { %3199 = vmatpush3.bf16.msra.mxu1 %v4075_v43  ;;  %3183 = vmatpush3.bf16.msra.mxu0 %v4201_v21 }
 0x141   :  { %3200 = vmatprep.subr.bf16.mxu1 %v3735_v0  ;;  %3184 = vmatprep.subr.bf16.mxu0 %v3735_v0 }
 0x144   :  { %3201 = vmatpush3.bf16.msra.mxu1 %v4089_v45  ;;  %3185 = vmatpush3.bf16.msra.mxu0 %v4212_v22  ;;  %v4287_v45 = vld [vmem:[#allocation7 + $0x78] sm:$0xff]  }
 0x145   :  { %3202 = vmatprep.subr.bf16.mxu1 %v3735_v0  ;;  %3186 = vmatprep.subr.bf16.mxu0 %v3735_v0 }
 0x148   :  { %3203 = vmatpush3.bf16.msra.mxu1 %v4103_v47  ;;  %3187 = vmatpush3.bf16.msra.mxu0 %v4221_v23  ;;  %v4293_v47 = vld [vmem:[#allocation7 + $0x70] sm:$0xff]  }
 0x149   :  { %3204 = vmatprep.subr.bf16.mxu1 %v3735_v0  ;;  %3188 = vmatprep.subr.bf16.mxu0 %v3735_v0 }
 0x14a   :  { %v537_v25 = vpop.f32.mrf.mxu0  ;;  %v580_v27 = vpop.f32.mrf.mxu1 }
 0x14b   :  { %v538_v26 = vadd.f32 %v537_v25, %v497_v6  ;;  %v4371_v25 = vld [vmem:[#allocation7 + $0xa8] sm:$0xff]  }
 0x14c   :  { %v3114_v28 = vpop.f32.mrf.mxu0  ;;  %3205 = vmatpush3.bf16.msra.mxu1 %v4119_v49  ;;  %3189 = vmatpush3.bf16.msra.mxu0 %v4230_v24  ;;  %v3134_v31 = vpop.f32.mrf.mxu1  ;;  %v4301_v49 = vld [vmem:[#allocation7 + $0x68] sm:$0xff]  }
 0x14d   :  { %v586_v30 = vadd.f32 %v580_v27, %v538_v26  ;;  %3206 = vmatprep.subr.bf16.mxu1 %v3735_v0  ;;  %3190 = vmatprep.subr.bf16.mxu0 %v3735_v0  ;;  %v4377_v26 = vld [vmem:[#allocation7 + $0xa0] sm:$0xff]   ;;  %v3614_v27 = vld [vmem:[#allocation7 + $0x98] sm:$0xff]  }
 0x14e   :  { %v540_v32 = vpop.f32.mrf.mxu0  ;;  %v583_v35 = vpop.f32.mrf.mxu1 }
 0x14f   :  { %v587_v34 = vadd.f32 %v2631_v3, %v586_v30  ;;  %v3615_v30 = vld [vmem:[#allocation7 + $0x90] sm:$0xff]  }
 0x150   :  { %v3115_v36 = vpop.f32.mrf.mxu0  ;;  %3207 = vmatpush3.bf16.msra.mxu1 %v4126_v50  ;;  %3191 = vmatpush3.bf16.msra.mxu0 %v3593_v29  ;;  %v3135_v38 = vpop.f32.mrf.mxu1  ;;  %v4303_v50 = vld [vmem:[#allocation7 + $0x28] sm:$0xff]  }
 0x151   :  { %v588_v37 = vmax.f32 %v587_v34, 0.0  ;;  %3208 = vmatprep.subr.bf16.mxu1 %v3735_v0  ;;  %3216 = vmatprep.subr.bf16.mxu0 %v3735_v0  ;;  %v3617_v38 = vld [vmem:[#allocation7 + $0x80] sm:$0xff]  }
 0x153   :  { %589 = vst [vmem:[#allocation3 + $0xb] sm:$0xff] %v588_v37  ;;  %3193 = vmatmul.mubr.bf16.vlgmr.msra.gmra.mxu0 %v820_v39  ;;  %v922_v40 = vpack.c.bf16 %v588_v37, %v588_v37 }
 0x154   :  { %3209 = vmatpush3.bf16.msra.mxu1 %v4138_v52  ;;  %3217 = vmatpush3.bf16.msra.mxu0 %v4068_v42  ;;  %v4311_v52 = vld [vmem:[#allocation7 + $0x20] sm:$0xff]  }
 0x155   :  { %3210 = vmatprep.subr.bf16.mxu1 %v3735_v0  ;;  %3218 = vmatprep.subr.bf16.mxu0 %v3735_v0 }
 0x156   :  { %3232 = vmatprep.mubr.msk.bf16.mxu0 %vm3736_vm1, %v3735_v0 }
 0x158   :  { %3211 = vmatpush3.bf16.msra.mxu1 %v4152_v54  ;;  %3219 = vmatpush3.bf16.msra.mxu0 %v4080_v44  ;;  %v4321_v54 = vld [vmem:[#allocation7 + $0x18] sm:$0xff]  }
 0x159   :  { %3236 = vmatprep.subr.bf16.mxu1 %v3735_v0  ;;  %3220 = vmatprep.subr.bf16.mxu0 %v3735_v0 }
 0x15a   :  { %v919_v41 = vld [vmem:[#allocation3 + $0xa] sm:$0xff] }
 0x15b   :  { %3213 = vmatmul.mubr.bf16.vlgmr.msra.gmra.mxu1 %v922_v40  ;;  %v920_v42 = vpack.c.bf16 %v919_v41, %v919_v41  ;;  %v1003_v43 = vld [vmem:[#allocation3 + $0xc] sm:$0xff] }
 0x15c   :  { %3237 = vmatpush3.bf16.msra.mxu1 %v4178_v14  ;;  %3221 = vmatpush3.bf16.msra.mxu0 %v4094_v46  ;;  %v1004_v44 = vpack.c.bf16 %v1003_v43, %v1003_v43  ;;  %v4289_v46 = vld [vmem:[#allocation7 + $0x38] sm:$0xff]  }
 0x15d   :  { %3238 = vmatprep.subr.bf16.mxu1 %v3735_v0  ;;  %3222 = vmatprep.subr.bf16.mxu0 %v3735_v0 }
 0x15e   :  { %3252 = vmatprep.mubr.msk.bf16.mxu1 %vm3736_vm1, %v3735_v0 }
 0x160   :  { %3239 = vmatpush3.bf16.msra.mxu1 %v4184_v17  ;;  %3223 = vmatpush3.bf16.msra.mxu0 %v4108_v48  ;;  %v4295_v48 = vld [vmem:[#allocation7 + $0x30] sm:$0xff]  }
 0x161   :  { %3240 = vmatprep.subr.bf16.mxu1 %v3735_v0  ;;  %3224 = vmatprep.subr.bf16.mxu0 %v3735_v0 }
 0x164   :  { %3241 = vmatpush3.bf16.msra.mxu1 %v4193_v19  ;;  %3225 = vmatpush3.bf16.msra.mxu0 %v4133_v51  ;;  %v4309_v51 = vld [vmem:[#allocation7 + $0x60] sm:$0xff]  }
 0x165   :  { %3242 = vmatprep.subr.bf16.mxu1 %v3735_v0  ;;  %3226 = vmatprep.subr.bf16.mxu0 %v3735_v0 }
 0x168   :  { %3243 = vmatpush3.bf16.msra.mxu1 %v4201_v21  ;;  %3227 = vmatpush3.bf16.msra.mxu0 %v4147_v53  ;;  %v4319_v53 = vld [vmem:[#allocation7 + $0x58] sm:$0xff]  }
 0x169   :  { %3244 = vmatprep.subr.bf16.mxu1 %v3735_v0  ;;  %3228 = vmatprep.subr.bf16.mxu0 %v3735_v0 }
 0x16c   :  { %3245 = vmatpush3.bf16.msra.mxu1 %v4212_v22  ;;  %3229 = vmatpush3.bf16.msra.mxu0 %v4161_v55  ;;  %v4326_v55 = vld [vmem:[#allocation7 + $0x50] sm:$0xff]  }
 0x16d   :  { %3246 = vmatprep.subr.bf16.mxu1 %v3735_v0  ;;  %3230 = vmatprep.subr.bf16.mxu0 %v3735_v0 }
 0x170   :  { %3247 = vmatpush3.bf16.msra.mxu1 %v4221_v23  ;;  %3231 = vmatpush3.bf16.msra.mxu0 %v4167_v56  ;;  %v4329_v56 = vld [vmem:[#allocation7 + $0x10] sm:$0xff]  }
 0x171   :  { %3248 = vmatprep.subr.bf16.mxu1 %v3735_v0  ;;  %3256 = vmatprep.subr.bf16.mxu0 %v3735_v0 }
 0x173   :  { %3233 = vmatmul.mubr.bf16.vlgmr.msra.gmra.mxu0 %v920_v42 }
 0x174   :  { %3249 = vmatpush3.bf16.msra.mxu1 %v4230_v24  ;;  %3272 = vmatprep.mubr.msk.bf16.mxu0 %vm3736_vm1, %v3735_v0  ;;  %v4361_v24 = vld [vmem:[#allocation7 + $0xb0] sm:$0xff]  }
 0x175   :  { %3250 = vmatprep.subr.bf16.mxu1 %v3735_v0  ;;  %3257 = vmatpush3.bf16.msra.mxu0 %v4287_v45 }
 0x176   :  { %3258 = vmatprep.subr.bf16.mxu0 %v3735_v0 }
 0x178   :  { %3251 = vmatpush3.bf16.msra.mxu1 %v3593_v29 }
 0x179   :  { %3276 = vmatprep.subr.bf16.mxu1 %v3735_v0  ;;  %3259 = vmatpush3.bf16.msra.mxu0 %v4293_v47 }
 0x17a   :  { %3260 = vmatprep.subr.bf16.mxu0 %v3735_v0 }
 0x17b   :  { %3253 = vmatmul.mubr.bf16.vlgmr.msra.gmra.mxu1 %v1004_v44 }
 0x17c   :  { %3292 = vmatprep.mubr.msk.bf16.mxu1 %vm3736_vm1, %v3735_v0  ;;  %3277 = vmatpush3.bf16.msra.mxu1 %v4289_v46 }
 0x17d   :  { %3278 = vmatprep.subr.bf16.mxu1 %v3735_v0  ;;  %3261 = vmatpush3.bf16.msra.mxu0 %v4301_v49 }
 0x17e   :  { %3262 = vmatprep.subr.bf16.mxu0 %v3735_v0 }
 0x180   :  { %3279 = vmatpush3.bf16.msra.mxu1 %v4295_v48 }
 0x181   :  { %3280 = vmatprep.subr.bf16.mxu1 %v3735_v0  ;;  %3263 = vmatpush3.bf16.msra.mxu0 %v4309_v51 }
 0x182   :  { %3264 = vmatprep.subr.bf16.mxu0 %v3735_v0 }
 0x184   :  { %3281 = vmatpush3.bf16.msra.mxu1 %v4303_v50 }
 0x185   :  { %3282 = vmatprep.subr.bf16.mxu1 %v3735_v0  ;;  %3265 = vmatpush3.bf16.msra.mxu0 %v4319_v53 }
 0x186   :  { %3266 = vmatprep.subr.bf16.mxu0 %v3735_v0 }
 0x188   :  { %3283 = vmatpush3.bf16.msra.mxu1 %v4311_v52 }
 0x189   :  { %3284 = vmatprep.subr.bf16.mxu1 %v3735_v0  ;;  %3267 = vmatpush3.bf16.msra.mxu0 %v4326_v55 }
 0x18a   :  { %3268 = vmatprep.subr.bf16.mxu0 %v3735_v0 }
 0x18c   :  { %3285 = vmatpush3.bf16.msra.mxu1 %v4321_v54 }
 0x18d   :  { %3286 = vmatprep.subr.bf16.mxu1 %v3735_v0  ;;  %3269 = vmatpush3.bf16.msra.mxu0 %v4334_v57 }
 0x18e   :  { %3270 = vmatprep.subr.bf16.mxu0 %v3735_v0 }
 0x190   :  { %3287 = vmatpush3.bf16.msra.mxu1 %v4329_v56 }
 0x191   :  { %3288 = vmatprep.subr.bf16.mxu1 %v3735_v0  ;;  %3271 = vmatpush3.bf16.msra.mxu0 %v4342_v59 }
 0x192   :  { %3296 = vmatprep.subr.bf16.mxu0 %v3735_v0 }
 0x194   :  { %3289 = vmatpush3.bf16.msra.mxu1 %v4337_v58 }
 0x195   :  { %3290 = vmatprep.subr.bf16.mxu1 %v3735_v0 }
 0x198   :  { %3291 = vmatpush3.bf16.msra.mxu1 %v4345_v60 }
 0x199   :  { %3316 = vmatprep.subr.bf16.mxu1 %v3735_v0 }
 0x1f3   :  { %v725_v61 = vpop.f32.mrf.mxu0 }
 0x1f5   :  { %v3154_v62 = vpop.f32.mrf.mxu0 }
 0x1f6   :  { %v4476_v62 = vld [vmem:[#allocation10 + $0x10] sm:$0xff]  }
 0x1f7   :  { %v728_v63 = vpop.f32.mrf.mxu0 }
 0x1f8   :  { %v4481_v63 = vld [vmem:[#allocation10 + $0x48] sm:$0xff]  }
 0x1f9   :  { %v3155_v1 = vpop.f32.mrf.mxu0 }
 0x1fa   :  { %v4484_v1 = vld [vmem:[#allocation10 + $0x8] sm:$0xff]  }
 0x1fb   :  { %v813_v2 = vpop.f32.mrf.mxu1 }
 0x1fc   :  { %v814_v6 = vadd.f32 %v813_v2, %v725_v61  ;;  %v4473_v61 = vld [vmem:[#allocation10 + $0x50] sm:$0xff]   ;;  %v4489_v2 = vld [vmem:[#allocation10 + $0x40] sm:$0xff]  }
 0x1fd   :  { %v3174_v3 = vpop.f32.mrf.mxu1 }
 0x1fe   :  { %v4492_v3 = vld [vmem:[#allocation10] sm:$0xff]  }
 0x1ff   :  { %v816_v4 = vpop.f32.mrf.mxu1 }
 0x201   :  { %v3175_v5 = vpop.f32.mrf.mxu1 }
 0x213   :  { %v903_v8 = vpop.f32.mrf.mxu0 }
 0x214   :  { %v909_v9 = vadd.f32 %v903_v8, %v814_v6 }
 0x215   :  { %v3194_v10 = vpop.f32.mrf.mxu0 }
 0x216   :  { %v916_v11 = vadd.f32 %v4354_v7, %v909_v9 }
 0x217   :  { %v906_v12 = vpop.f32.mrf.mxu0 }
 0x218   :  { %v917_v13 = vmax.f32 %v916_v11, 0.0 }
 0x219   :  { %v3195_v14 = vpop.f32.mrf.mxu0 }
 0x21a   :  { %918 = vst [vmem:[#allocation4 + $0x1] sm:$0xff] %v917_v13  ;;  %v4501_v13 = vld [vmem:[%s5006_s6] ss:$0 sm:$0xff] }
 0x21b   :  { %v957_v15 = vpop.f32.mrf.mxu1 }
 0x21d   :  { %v3214_v16 = vpop.f32.mrf.mxu1 }
 0x21f   :  { %v960_v17 = vpop.f32.mrf.mxu1 }
 0x221   :  { %v3215_v19 = vpop.f32.mrf.mxu1  ;;  %v1101_v20 = vld [vmem:[#allocation4 + $0x1] ss:$2 sm:$0xf]  ;;  %v1098_v21 = vld [vmem:[#allocation4] ss:$2 sm:$0xf] }
 0x222   :  { %v1102_v22 = vpack.c.bf16 %v1101_v20, %v1101_v20  ;;  %v1099_v23 = vpack.c.bf16 %v1098_v21, %v1098_v21  ;;  %v1280_v41 = vld [vmem:[#allocation4 + $0x2] ss:$2 sm:$0xf] }
 0x223   :  { %v1281_v44 = vpack.c.bf16 %v1280_v41, %v1280_v41 }
 0x224   :  { %3273 = vmatmul.mubr.bf16.vlgmr.msra.gmra.mxu0 %v1102_v22  ;;  %3293 = vmatmul.mubr.bf16.vlgmr.msra.gmra.mxu1 %v1099_v23 }
 0x225   :  { %3297 = vmatpush3.bf16.msra.mxu0 %v4357_v18  ;;  %3317 = vmatpush3.bf16.msra.mxu1 %v4287_v45 }
 0x226   :  { %3298 = vmatprep.subr.bf16.mxu0 %v3735_v0  ;;  %3318 = vmatprep.subr.bf16.mxu1 %v3735_v0 }
 0x227   :  { %3312 = vmatprep.mubr.msk.bf16.mxu0 %vm3736_vm1, %v3735_v0  ;;  %3332 = vmatprep.mubr.msk.bf16.mxu1 %vm3736_vm1, %v3735_v0 }
 0x229   :  { %3299 = vmatpush3.bf16.msra.mxu0 %v4361_v24  ;;  %3319 = vmatpush3.bf16.msra.mxu1 %v4293_v47 }
 0x22a   :  { %3300 = vmatprep.subr.bf16.mxu0 %v3735_v0  ;;  %3320 = vmatprep.subr.bf16.mxu1 %v3735_v0 }
 0x22d   :  { %3301 = vmatpush3.bf16.msra.mxu0 %v4371_v25  ;;  %3321 = vmatpush3.bf16.msra.mxu1 %v4301_v49 }
 0x22e   :  { %3302 = vmatprep.subr.bf16.mxu0 %v3735_v0  ;;  %3322 = vmatprep.subr.bf16.mxu1 %v3735_v0 }
 0x231   :  { %3303 = vmatpush3.bf16.msra.mxu0 %v4377_v26  ;;  %3323 = vmatpush3.bf16.msra.mxu1 %v4309_v51  ;;  %v4431_v51 = vld [vmem:[#allocation10 + $0x78] sm:$0xff]  }
 0x232   :  { %3304 = vmatprep.subr.bf16.mxu0 %v3735_v0  ;;  %3324 = vmatprep.subr.bf16.mxu1 %v3735_v0 }
 0x233   :  { %v997_v28 = vpop.f32.mrf.mxu0 }
 0x234   :  { %v998_v34 = vadd.f32 %v997_v28, %v957_v15 }
 0x235   :  { %3305 = vmatpush3.bf16.msra.mxu0 %v3614_v27  ;;  %v3234_v29 = vpop.f32.mrf.mxu0  ;;  %3325 = vmatpush3.bf16.msra.mxu1 %v4319_v53  ;;  %v4437_v53 = vld [vmem:[#allocation10 + $0x70] sm:$0xff]  }
 0x236   :  { %3306 = vmatprep.subr.bf16.mxu0 %v3735_v0  ;;  %3326 = vmatprep.subr.bf16.mxu1 %v3735_v0 }
 0x237   :  { %v1000_v31 = vpop.f32.mrf.mxu0 }
 0x238   :  { %v4518_v31 = vld [vmem:[#allocation10 + $0xa8] sm:$0xff]  }
 0x239   :  { %3307 = vmatpush3.bf16.msra.mxu0 %v3615_v30  ;;  %v3235_v32 = vpop.f32.mrf.mxu0  ;;  %3327 = vmatpush3.bf16.msra.mxu1 %v4326_v55  ;;  %v4447_v55 = vld [vmem:[#allocation10 + $0x68] sm:$0xff]  }
 0x23a   :  { %3308 = vmatprep.subr.bf16.mxu0 %v3735_v0  ;;  %3328 = vmatprep.subr.bf16.mxu1 %v3735_v0  ;;  %v4524_v32 = vld [vmem:[#allocation10 + $0xa0] sm:$0xff]  }
 0x23b   :  { %v1039_v35 = vpop.f32.mrf.mxu1 }
 0x23c   :  { %v1045_v36 = vadd.f32 %v1039_v35, %v998_v34 }
 0x23d   :  { %v3254_v37 = vpop.f32.mrf.mxu1  ;;  %3309 = vmatpush3.bf16.msra.mxu0 %v3616_v33  ;;  %3329 = vmatpush3.bf16.msra.mxu1 %v4334_v57  ;;  %v4455_v57 = vld [vmem:[#allocation10 + $0x60] sm:$0xff]  }
 0x23e   :  { %v1046_v39 = vadd.f32 %v4354_v7, %v1045_v36  ;;  %3310 = vmatprep.subr.bf16.mxu0 %v3735_v0  ;;  %3330 = vmatprep.subr.bf16.mxu1 %v3735_v0  ;;  %v3639_v36 = vld [vmem:[#allocation10 + $0x90] sm:$0xff]  }
 0x23f   :  { %v1042_v40 = vpop.f32.mrf.mxu1 }
 0x240   :  { %v1047_v42 = vmax.f32 %v1046_v39, 0.0  ;;  %v3640_v39 = vld [vmem:[#allocation10 + $0x88] sm:$0xff]  }
 0x241   :  { %v3255_v43 = vpop.f32.mrf.mxu1  ;;  %3311 = vmatpush3.bf16.msra.mxu0 %v3617_v38  ;;  %3331 = vmatpush3.bf16.msra.mxu1 %v4342_v59  ;;  %v4466_v59 = vld [vmem:[#allocation10 + $0x58] sm:$0xff]  }
 0x242   :  { %1048 = vst [vmem:[#allocation4 + $0xb] sm:$0xff] %v1047_v42  ;;  %3336 = vmatprep.subr.bf16.mxu0 %v3735_v0  ;;  %3356 = vmatprep.subr.bf16.mxu1 %v3735_v0 }
 0x244   :  { %3313 = vmatmul.mubr.bf16.vlgmr.msra.gmra.mxu0 %v1281_v44  ;;  %v3641_v44 = vld [vmem:[#allocation10 + $0x80] sm:$0xff]  }
 0x245   :  { %3337 = vmatpush3.bf16.msra.mxu0 %v4289_v46  ;;  %3352 = vmatprep.mubr.msk.bf16.mxu0 %vm3736_vm1, %v3735_v0 }
 0x246   :  { %3338 = vmatprep.subr.bf16.mxu0 %v3735_v0 }
 0x249   :  { %v1384_v45 = vld [vmem:[#allocation4 + $0xb] ss:$2 sm:$0xf]  ;;  %3339 = vmatpush3.bf16.msra.mxu0 %v4295_v48  ;;  %v1381_v46 = vld [vmem:[#allocation4 + $0xa] ss:$2 sm:$0xf] }
 0x24a   :  { %v1385_v47 = vpack.c.bf16 %v1384_v45, %v1384_v45  ;;  %3340 = vmatprep.subr.bf16.mxu0 %v3735_v0  ;;  %v1382_v48 = vpack.c.bf16 %v1381_v46, %v1381_v46  ;;  %v1467_v49 = vld [vmem:[#allocation4 + $0xc] ss:$2 sm:$0xf] }
 0x24c   :  { %3333 = vmatmul.mubr.bf16.vlgmr.msra.gmra.mxu1 %v1385_v47 }
 0x24d   :  { %3357 = vmatpush3.bf16.msra.mxu1 %v4357_v18  ;;  %3341 = vmatpush3.bf16.msra.mxu0 %v4303_v50  ;;  %v1468_v50 = vpack.c.bf16 %v1467_v49, %v1467_v49 }
 0x24e   :  { %3358 = vmatprep.subr.bf16.mxu1 %v3735_v0  ;;  %3342 = vmatprep.subr.bf16.mxu0 %v3735_v0 }
 0x24f   :  { %3372 = vmatprep.mubr.msk.bf16.mxu1 %vm3736_vm1, %v3735_v0 }
 0x251   :  { %3359 = vmatpush3.bf16.msra.mxu1 %v4361_v24  ;;  %3343 = vmatpush3.bf16.msra.mxu0 %v4311_v52  ;;  %v4434_v52 = vld [vmem:[#allocation10 + $0x38] sm:$0xff]  }
 0x252   :  { %3360 = vmatprep.subr.bf16.mxu1 %v3735_v0  ;;  %3344 = vmatprep.subr.bf16.mxu0 %v3735_v0  ;;  %v4504_v24 = vld [vmem:[#allocation10 + $0xb8] sm:$0xff]  }
 0x255   :  { %3361 = vmatpush3.bf16.msra.mxu1 %v4371_v25  ;;  %3345 = vmatpush3.bf16.msra.mxu0 %v4321_v54  ;;  %v4441_v54 = vld [vmem:[#allocation10 + $0x30] sm:$0xff]  }
 0x256   :  { %3362 = vmatprep.subr.bf16.mxu1 %v3735_v0  ;;  %3346 = vmatprep.subr.bf16.mxu0 %v3735_v0 }
 0x259   :  { %3363 = vmatpush3.bf16.msra.mxu1 %v4377_v26  ;;  %3347 = vmatpush3.bf16.msra.mxu0 %v4329_v56  ;;  %v4451_v56 = vld [vmem:[#allocation10 + $0x28] sm:$0xff]  }
 0x25a   :  { %3364 = vmatprep.subr.bf16.mxu1 %v3735_v0  ;;  %3348 = vmatprep.subr.bf16.mxu0 %v3735_v0 }
 0x25d   :  { %3365 = vmatpush3.bf16.msra.mxu1 %v3614_v27  ;;  %3349 = vmatpush3.bf16.msra.mxu0 %v4337_v58  ;;  %v4459_v58 = vld [vmem:[#allocation10 + $0x20] sm:$0xff]  }
 0x25e   :  { %3366 = vmatprep.subr.bf16.mxu1 %v3735_v0  ;;  %3350 = vmatprep.subr.bf16.mxu0 %v3735_v0 }
 0x261   :  { %3367 = vmatpush3.bf16.msra.mxu1 %v3615_v30  ;;  %3351 = vmatpush3.bf16.msra.mxu0 %v4345_v60  ;;  %v4468_v60 = vld [vmem:[#allocation10 + $0x18] sm:$0xff]   ;;  %v4508_v30 = vld [vmem:[#allocation10 + $0xb0] sm:$0xff]  }
 0x262   :  { %3368 = vmatprep.subr.bf16.mxu1 %v3735_v0  ;;  %3376 = vmatprep.subr.bf16.mxu0 %v3735_v0 }
 0x264   :  { %3353 = vmatmul.mubr.bf16.vlgmr.msra.gmra.mxu0 %v1382_v48 }
 0x265   :  { %3369 = vmatpush3.bf16.msra.mxu1 %v3616_v33  ;;  %3392 = vmatprep.mubr.msk.bf16.mxu0 %vm3736_vm1, %v3735_v0  ;;  %v3638_v33 = vld [vmem:[#allocation10 + $0x98] sm:$0xff]  }
 0x266   :  { %3370 = vmatprep.subr.bf16.mxu1 %v3735_v0  ;;  %3377 = vmatpush3.bf16.msra.mxu0 %v4431_v51 }
 0x267   :  { %3378 = vmatprep.subr.bf16.mxu0 %v3735_v0 }
 0x269   :  { %3371 = vmatpush3.bf16.msra.mxu1 %v3617_v38 }
 0x26a   :  { %3396 = vmatprep.subr.bf16.mxu1 %v3735_v0  ;;  %3379 = vmatpush3.bf16.msra.mxu0 %v4437_v53 }
 0x26b   :  { %3380 = vmatprep.subr.bf16.mxu0 %v3735_v0 }
 0x26c   :  { %3373 = vmatmul.mubr.bf16.vlgmr.msra.gmra.mxu1 %v1468_v50 }
 0x26d   :  { %3397 = vmatpush3.bf16.msra.mxu1 %v4434_v52  ;;  %3412 = vmatprep.mubr.msk.bf16.mxu1 %vm3736_vm1, %v3735_v0 }
 0x26e   :  { %3398 = vmatprep.subr.bf16.mxu1 %v3735_v0  ;;  %3381 = vmatpush3.bf16.msra.mxu0 %v4447_v55 }
 0x26f   :  { %3382 = vmatprep.subr.bf16.mxu0 %v3735_v0 }
 0x271   :  { %3399 = vmatpush3.bf16.msra.mxu1 %v4441_v54 }
 0x272   :  { %3400 = vmatprep.subr.bf16.mxu1 %v3735_v0  ;;  %3383 = vmatpush3.bf16.msra.mxu0 %v4455_v57 }
 0x273   :  { %3384 = vmatprep.subr.bf16.mxu0 %v3735_v0 }
 0x275   :  { %3401 = vmatpush3.bf16.msra.mxu1 %v4451_v56 }
 0x276   :  { %3402 = vmatprep.subr.bf16.mxu1 %v3735_v0  ;;  %3385 = vmatpush3.bf16.msra.mxu0 %v4466_v59 }
 0x277   :  { %3386 = vmatprep.subr.bf16.mxu0 %v3735_v0 }
 0x279   :  { %3403 = vmatpush3.bf16.msra.mxu1 %v4459_v58 }
 0x27a   :  { %3404 = vmatprep.subr.bf16.mxu1 %v3735_v0  ;;  %3387 = vmatpush3.bf16.msra.mxu0 %v4473_v61 }
 0x27b   :  { %3388 = vmatprep.subr.bf16.mxu0 %v3735_v0 }
 0x27d   :  { %3405 = vmatpush3.bf16.msra.mxu1 %v4468_v60 }
 0x27e   :  { %3406 = vmatprep.subr.bf16.mxu1 %v3735_v0  ;;  %3389 = vmatpush3.bf16.msra.mxu0 %v4481_v63 }
 0x27f   :  { %3390 = vmatprep.subr.bf16.mxu0 %v3735_v0 }
 0x281   :  { %3407 = vmatpush3.bf16.msra.mxu1 %v4476_v62 }
 0x282   :  { %3408 = vmatprep.subr.bf16.mxu1 %v3735_v0  ;;  %3391 = vmatpush3.bf16.msra.mxu0 %v4489_v2 }
 0x283   :  { %3416 = vmatprep.subr.bf16.mxu0 %v3735_v0 }
 0x285   :  { %3409 = vmatpush3.bf16.msra.mxu1 %v4484_v1 }
 0x286   :  { %3410 = vmatprep.subr.bf16.mxu1 %v3735_v0 }
 0x289   :  { %3411 = vmatpush3.bf16.msra.mxu1 %v4492_v3 }
 0x28a   :  { %3436 = vmatprep.subr.bf16.mxu1 %v3735_v0 }
 0x2e4   :  { %v1185_v4 = vpop.f32.mrf.mxu0  ;;  %v1273_v5 = vpop.f32.mrf.mxu1 }
 0x2e5   :  { %v1274_v12 = vadd.f32 %v1273_v5, %v1185_v4  ;;  %v2062_v4 = vld [vmem:[#allocation12 + $0x28] sm:$0xff]  ;;  %v2061_v5 = vld [vmem:[#allocation12 + $0x20] sm:$0xff] }
 0x2e6   :  { %v3274_v6 = vpop.f32.mrf.mxu0  ;;  %v3294_v7 = vpop.f32.mrf.mxu1 }
 0x2e7   :  { %v2060_v6 = vld [vmem:[#allocation12 + $0x18] sm:$0xff]  ;;  %v2059_v7 = vld [vmem:[#allocation12 + $0x10] sm:$0xff] }
 0x2e8   :  { %v1188_v8 = vpop.f32.mrf.mxu0  ;;  %v1276_v9 = vpop.f32.mrf.mxu1 }
 0x2e9   :  { %v2058_v8 = vld [vmem:[#allocation12 + $0x8] sm:$0xff] }
 0x2ea   :  { %v3275_v10 = vpop.f32.mrf.mxu0  ;;  %v3295_v11 = vpop.f32.mrf.mxu1 }
 0x304   :  { %v1364_v14 = vpop.f32.mrf.mxu0 }
 0x305   :  { %v1370_v15 = vadd.f32 %v1364_v14, %v1274_v12 }
 0x306   :  { %v3314_v16 = vpop.f32.mrf.mxu0 }
 0x307   :  { %v1377_v17 = vadd.f32 %v4501_v13, %v1370_v15 }
 0x308   :  { %v1367_v18 = vpop.f32.mrf.mxu0 }
 0x309   :  { %v1378_v19 = vmax.f32 %v1377_v17, 0.0  ;;  %v2706_v18 = vld [vmem:[%s5008_s8] ss:$0 sm:$0xff] }
 0x30a   :  { %v3315_v20 = vpop.f32.mrf.mxu0 }
 0x30b   :  { %1379 = vst [vmem:[#allocation5 + $0x1] sm:$0xf] %v1378_v19 }
 0x30c   :  { %v1420_v21 = vpop.f32.mrf.mxu1 }
 0x30e   :  { %v3334_v22 = vpop.f32.mrf.mxu1 }
 0x310   :  { %v1423_v23 = vpop.f32.mrf.mxu1 }
 0x312   :  { %v3335_v25 = vpop.f32.mrf.mxu1  ;;  %v1565_v26 = vld [vmem:[#allocation5 + $0x1] ss:$2 sm:$0x3]  ;;  %v1562_v27 = vld [vmem:[#allocation5] ss:$2 sm:$0x3] }
 0x313   :  { %v1566_v28 = vpack.c.bf16 %v1565_v26, %v1565_v26  ;;  %v1563_v29 = vpack.c.bf16 %v1562_v27, %v1562_v27  ;;  %v1744_v46 = vld [vmem:[#allocation5 + $0x2] ss:$2 sm:$0x3] }
 0x314   :  { %v1745_v50 = vpack.c.bf16 %v1744_v46, %v1744_v46  ;;  %v2207_v46 = vld [vmem:[%s5012_s12 + $0x1c8] sm:$0xff] }
 0x315   :  { %3393 = vmatmul.mubr.bf16.vlgmr.msra.gmra.mxu0 %v1566_v28  ;;  %3413 = vmatmul.mubr.bf16.vlgmr.msra.gmra.mxu1 %v1563_v29 }
 0x316   :  { %3417 = vmatpush3.bf16.msra.mxu0 %v4504_v24  ;;  %3437 = vmatpush3.bf16.msra.mxu1 %v4431_v51 }
 0x317   :  { %3418 = vmatprep.subr.bf16.mxu0 %v3735_v0  ;;  %3438 = vmatprep.subr.bf16.mxu1 %v3735_v0 }
 0x318   :  { %3432 = vmatprep.mubr.msk.bf16.mxu0 %vm3736_vm1, %v3735_v0  ;;  %3452 = vmatprep.mubr.msk.bf16.mxu1 %vm3736_vm1, %v3735_v0 }
 0x31a   :  { %3419 = vmatpush3.bf16.msra.mxu0 %v4508_v30  ;;  %3439 = vmatpush3.bf16.msra.mxu1 %v4437_v53 }
 0x31b   :  { %3420 = vmatprep.subr.bf16.mxu0 %v3735_v0  ;;  %3440 = vmatprep.subr.bf16.mxu1 %v3735_v0 }
 0x31e   :  { %3421 = vmatpush3.bf16.msra.mxu0 %v4518_v31  ;;  %3441 = vmatpush3.bf16.msra.mxu1 %v4447_v55 }
 0x31f   :  { %3422 = vmatprep.subr.bf16.mxu0 %v3735_v0  ;;  %3442 = vmatprep.subr.bf16.mxu1 %v3735_v0 }
 0x322   :  { %3423 = vmatpush3.bf16.msra.mxu0 %v4524_v32  ;;  %3443 = vmatpush3.bf16.msra.mxu1 %v4455_v57  ;;  %v2072_v57 = vld [vmem:[#allocation12 + $0x78] sm:$0xff] }
 0x323   :  { %3424 = vmatprep.subr.bf16.mxu0 %v3735_v0  ;;  %3444 = vmatprep.subr.bf16.mxu1 %v3735_v0 }
 0x324   :  { %v1460_v34 = vpop.f32.mrf.mxu0 }
 0x325   :  { %v1461_v40 = vadd.f32 %v1460_v34, %v1420_v21 }
 0x326   :  { %3425 = vmatpush3.bf16.msra.mxu0 %v3638_v33  ;;  %v3354_v35 = vpop.f32.mrf.mxu0  ;;  %3445 = vmatpush3.bf16.msra.mxu1 %v4466_v59  ;;  %v2070_v59 = vld [vmem:[#allocation12 + $0x68] sm:$0xff] }
 0x327   :  { %3426 = vmatprep.subr.bf16.mxu0 %v3735_v0  ;;  %3446 = vmatprep.subr.bf16.mxu1 %v3735_v0 }
 0x328   :  { %v1463_v37 = vpop.f32.mrf.mxu0 }
 0x32a   :  { %3427 = vmatpush3.bf16.msra.mxu0 %v3639_v36  ;;  %v3355_v38 = vpop.f32.mrf.mxu0  ;;  %3447 = vmatpush3.bf16.msra.mxu1 %v4473_v61  ;;  %v2068_v61 = vld [vmem:[#allocation12 + $0x58] sm:$0xff] }
 0x32b   :  { %3428 = vmatprep.subr.bf16.mxu0 %v3735_v0  ;;  %3448 = vmatprep.subr.bf16.mxu1 %v3735_v0 }
 0x32c   :  { %v1503_v41 = vpop.f32.mrf.mxu1 }
 0x32d   :  { %v1509_v42 = vadd.f32 %v1503_v41, %v1461_v40 }
 0x32e   :  { %v3374_v43 = vpop.f32.mrf.mxu1  ;;  %3429 = vmatpush3.bf16.msra.mxu0 %v3640_v39  ;;  %3449 = vmatpush3.bf16.msra.mxu1 %v4481_v63  ;;  %v2066_v63 = vld [vmem:[#allocation12 + $0x48] sm:$0xff] }
 0x32f   :  { %v1510_v45 = vadd.f32 %v4501_v13, %v1509_v42  ;;  %3430 = vmatprep.subr.bf16.mxu0 %v3735_v0  ;;  %3450 = vmatprep.subr.bf16.mxu1 %v3735_v0  ;;  %v1977_v42 = vld [vmem:[%s5009_s9] sm:$0x3] }
 0x330   :  { %v1506_v47 = vpop.f32.mrf.mxu1 }
 0x331   :  { %v1511_v48 = vmax.f32 %v1510_v45, 0.0  ;;  %v2211_v45 = vld [vmem:[%s5012_s12 + $0x1e8] sm:$0xff]  ;;  %v2210_v47 = vld [vmem:[%s5012_s12 + $0x1e0] sm:$0xff] }
 0x332   :  { %v3375_v49 = vpop.f32.mrf.mxu1  ;;  %3431 = vmatpush3.bf16.msra.mxu0 %v3641_v44  ;;  %3451 = vmatpush3.bf16.msra.mxu1 %v4489_v2  ;;  %v2064_v2 = vld [vmem:[#allocation12 + $0x38] sm:$0xff] }
 0x333   :  { %1512 = vst [vmem:[#allocation5 + $0x7] sm:$0xf] %v1511_v48  ;;  %3456 = vmatprep.subr.bf16.mxu0 %v3735_v0  ;;  %3476 = vmatprep.subr.bf16.mxu1 %v3735_v0  ;;  %v2213_v48 = vld [vmem:[%s5012_s12 + $0x1f8] sm:$0xff]  ;;  %v2206_v49 = vld [vmem:[%s5012_s12 + $0x1c0] sm:$0xff] }
 0x335   :  { %3433 = vmatmul.mubr.bf16.vlgmr.msra.gmra.mxu0 %v1745_v50  ;;  %v2203_v50 = vld [vmem:[%s5012_s12 + $0x1a8] sm:$0xff] }
 0x336   :  { %3457 = vmatpush3.bf16.msra.mxu0 %v4434_v52  ;;  %3472 = vmatprep.mubr.msk.bf16.mxu0 %vm3736_vm1, %v3735_v0 }
 0x337   :  { %3458 = vmatprep.subr.bf16.mxu0 %v3735_v0 }
 0x33a   :  { %v1848_v51 = vld [vmem:[#allocation5 + $0x7] ss:$2 sm:$0x3]  ;;  %3459 = vmatpush3.bf16.msra.mxu0 %v4441_v54  ;;  %v1845_v52 = vld [vmem:[#allocation5 + $0x6] ss:$2 sm:$0x3] }
 0x33b   :  { %v1849_v53 = vpack.c.bf16 %v1848_v51, %v1848_v51  ;;  %3460 = vmatprep.subr.bf16.mxu0 %v3735_v0  ;;  %v1846_v54 = vpack.c.bf16 %v1845_v52, %v1845_v52  ;;  %v1931_v55 = vld [vmem:[#allocation5 + $0x8] ss:$2 sm:$0x3] }
 0x33c   :  { %v2202_v51 = vld [vmem:[%s5012_s12 + $0x1a0] sm:$0xff] }
 0x33d   :  { %3453 = vmatmul.mubr.bf16.vlgmr.msra.gmra.mxu1 %v1849_v53  ;;  %v2199_v53 = vld [vmem:[%s5012_s12 + $0x188] sm:$0xff]  ;;  %v2198_v52 = vld [vmem:[%s5012_s12 + $0x180] sm:$0xff] }
 0x33e   :  { %3477 = vmatpush3.bf16.msra.mxu1 %v4504_v24  ;;  %3461 = vmatpush3.bf16.msra.mxu0 %v4451_v56  ;;  %v1932_v56 = vpack.c.bf16 %v1931_v55, %v1931_v55  ;;  %v2194_v55 = vld [vmem:[%s5012_s12 + $0x160] sm:$0xff] }
 0x33f   :  { %3478 = vmatprep.subr.bf16.mxu1 %v3735_v0  ;;  %3462 = vmatprep.subr.bf16.mxu0 %v3735_v0 }
 0x340   :  { %3492 = vmatprep.mubr.msk.bf16.mxu1 %vm3736_vm1, %v3735_v0 }
 0x342   :  { %3479 = vmatpush3.bf16.msra.mxu1 %v4508_v30  ;;  %3463 = vmatpush3.bf16.msra.mxu0 %v4459_v58  ;;  %v2071_v58 = vld [vmem:[#allocation12 + $0x70] sm:$0xff] }
 0x343   :  { %3480 = vmatprep.subr.bf16.mxu1 %v3735_v0  ;;  %3464 = vmatprep.subr.bf16.mxu0 %v3735_v0 }
 0x346   :  { %3481 = vmatpush3.bf16.msra.mxu1 %v4518_v31  ;;  %3465 = vmatpush3.bf16.msra.mxu0 %v4468_v60  ;;  %v2069_v60 = vld [vmem:[#allocation12 + $0x60] sm:$0xff] }
 0x347   :  { %3482 = vmatprep.subr.bf16.mxu1 %v3735_v0  ;;  %3466 = vmatprep.subr.bf16.mxu0 %v3735_v0 }
 0x34a   :  { %3483 = vmatpush3.bf16.msra.mxu1 %v4524_v32  ;;  %3467 = vmatpush3.bf16.msra.mxu0 %v4476_v62  ;;  %v2067_v62 = vld [vmem:[#allocation12 + $0x50] sm:$0xff] }
 0x34b   :  { %3484 = vmatprep.subr.bf16.mxu1 %v3735_v0  ;;  %3468 = vmatprep.subr.bf16.mxu0 %v3735_v0 }
 0x34e   :  { %3485 = vmatpush3.bf16.msra.mxu1 %v3638_v33  ;;  %3469 = vmatpush3.bf16.msra.mxu0 %v4484_v1  ;;  %v2065_v1 = vld [vmem:[#allocation12 + $0x40] sm:$0xff] }
 0x34f   :  { %3486 = vmatprep.subr.bf16.mxu1 %v3735_v0  ;;  %3470 = vmatprep.subr.bf16.mxu0 %v3735_v0 }
 0x352   :  { %3487 = vmatpush3.bf16.msra.mxu1 %v3639_v36  ;;  %3471 = vmatpush3.bf16.msra.mxu0 %v4492_v3  ;;  %v2063_v3 = vld [vmem:[#allocation12 + $0x30] sm:$0xff] }
 0x353   :  { %3488 = vmatprep.subr.bf16.mxu1 %v3735_v0  ;;  %3496 = vmatprep.subr.mxu0 %v3735_v0 }
 0x355   :  { %3473 = vmatmul.mubr.bf16.vlgmr.msra.gmra.mxu0 %v1846_v54  ;;  %v2195_v54 = vld [vmem:[%s5012_s12 + $0x168] sm:$0xff] }
 0x356   :  { %3489 = vmatpush3.bf16.msra.mxu1 %v3640_v39  ;;  %3498 = vmatprep.mubr.msk.f32.mxu0 %vm3736_vm1, %v3735_v0 }
 0x357   :  { %3490 = vmatprep.subr.bf16.mxu1 %v3735_v0 }
 0x35a   :  { %3491 = vmatpush3.bf16.msra.mxu1 %v3641_v44  ;;  %v2057_v44 = vld [vmem:[#allocation12] sm:$0xff] }
 0x35b   :  { %3501 = vmatprep.subr.mxu1 %v3735_v0 }
 0x35d   :  { %3493 = vmatmul.mubr.bf16.vlgmr.msra.gmra.mxu1 %v1932_v56  ;;  %v2191_v56 = vld [vmem:[%s5012_s12 + $0x148] sm:$0xff] }
 0x35e   :  { %3533 = vmatprep.mubr.msk.f32.mxu1 %vm3736_vm1, %v3735_v0  ;;  %3502 = vmatpush3.msra.mxu1 %v2072_v57  ;;  %v2190_v57 = vld [vmem:[%s5012_s12 + $0x140] sm:$0xff] }
 0x35f   :  { %3503 = vmatprep.subr.mxu1 %v3735_v0 }
 0x360   :  { %3504 = vmatpush3.msra.mxu1 %v2071_v58  ;;  %v2187_v58 = vld [vmem:[%s5012_s12 + $0x128] sm:$0xff] }
 0x361   :  { %3505 = vmatprep.subr.mxu1 %v3735_v0 }
 0x362   :  { %3506 = vmatpush3.msra.mxu1 %v2070_v59  ;;  %v2186_v59 = vld [vmem:[%s5012_s12 + $0x120] sm:$0xff] }
 0x363   :  { %3507 = vmatprep.subr.mxu1 %v3735_v0 }
 0x364   :  { %3508 = vmatpush3.msra.mxu1 %v2069_v60  ;;  %v2183_v60 = vld [vmem:[%s5012_s12 + $0x108] sm:$0xff] }
 0x365   :  { %3509 = vmatprep.subr.mxu1 %v3735_v0 }
 0x366   :  { %3510 = vmatpush3.msra.mxu1 %v2068_v61  ;;  %v2182_v61 = vld [vmem:[%s5012_s12 + $0x100] sm:$0xff] }
 0x367   :  { %3511 = vmatprep.subr.mxu1 %v3735_v0 }
 0x368   :  { %3512 = vmatpush3.msra.mxu1 %v2067_v62  ;;  %v2179_v62 = vld [vmem:[%s5012_s12 + $0xe8] sm:$0xff] }
 0x369   :  { %3513 = vmatprep.subr.mxu1 %v3735_v0 }
 0x36a   :  { %3514 = vmatpush3.msra.mxu1 %v2066_v63  ;;  %v2178_v63 = vld [vmem:[%s5012_s12 + $0xe0] sm:$0xff] }
 0x36b   :  { %3515 = vmatprep.subr.mxu1 %v3735_v0 }
 0x36c   :  { %3516 = vmatpush3.msra.mxu1 %v2065_v1  ;;  %v2175_v1 = vld [vmem:[%s5012_s12 + $0xc8] sm:$0xff] }
 0x36d   :  { %3517 = vmatprep.subr.mxu1 %v3735_v0 }
 0x36e   :  { %3518 = vmatpush3.msra.mxu1 %v2064_v2  ;;  %v2174_v2 = vld [vmem:[%s5012_s12 + $0xc0] sm:$0xff] }
 0x36f   :  { %3519 = vmatprep.subr.mxu1 %v3735_v0 }
 0x370   :  { %3520 = vmatpush3.msra.mxu1 %v2063_v3  ;;  %v2171_v3 = vld [vmem:[%s5012_s12 + $0xa8] sm:$0xff] }
 0x371   :  { %3521 = vmatprep.subr.mxu1 %v3735_v0 }
 0x372   :  { %3522 = vmatpush3.msra.mxu1 %v2062_v4  ;;  %v2170_v4 = vld [vmem:[%s5012_s12 + $0xa0] sm:$0xff] }
 0x373   :  { %3523 = vmatprep.subr.mxu1 %v3735_v0 }
 0x374   :  { %3524 = vmatpush3.msra.mxu1 %v2061_v5  ;;  %v2167_v5 = vld [vmem:[%s5012_s12 + $0x88] sm:$0xff] }
 0x375   :  { %3525 = vmatprep.subr.mxu1 %v3735_v0 }
 0x376   :  { %3526 = vmatpush3.msra.mxu1 %v2060_v6  ;;  %v2166_v6 = vld [vmem:[%s5012_s12 + $0x80] sm:$0xff] }
 0x377   :  { %3527 = vmatprep.subr.mxu1 %v3735_v0 }
 0x378   :  { %3528 = vmatpush3.msra.mxu1 %v2059_v7  ;;  %v2163_v7 = vld [vmem:[%s5012_s12 + $0x68] sm:$0xff] }
 0x379   :  { %3529 = vmatprep.subr.mxu1 %v3735_v0 }
 0x37a   :  { %3530 = vmatpush3.msra.mxu1 %v2058_v8  ;;  %v2162_v8 = vld [vmem:[%s5012_s12 + $0x60] sm:$0xff] }
 0x37b   :  { %3531 = vmatprep.subr.mxu1 %v3735_v0 }
 0x37c   :  { %3532 = vmatpush3.msra.mxu1 %v2057_v44  ;;  %v2153_v44 = vld [vmem:[%s5012_s12 + $0x18] sm:$0xff] }
 0x37d   :  { %2307 = vmatprep.subr.mxu1 %v2213_v48  ;;  %v2441_v48 = vld [vmem:[%s5014_s14 + $0x1f8] sm:$0xff] }
 0x3d5   :  { %v1649_v9 = vpop.f32.mrf.mxu0  ;;  %v1737_v10 = vpop.f32.mrf.mxu1 }
 0x3d6   :  { %v1738_v17 = vadd.f32 %v1737_v10, %v1649_v9  ;;  %v2159_v9 = vld [vmem:[%s5012_s12 + $0x48] sm:$0xff]  ;;  %v2158_v10 = vld [vmem:[%s5012_s12 + $0x40] sm:$0xff] }
 0x3d7   :  { %v3394_v11 = vpop.f32.mrf.mxu0  ;;  %v3414_v12 = vpop.f32.mrf.mxu1 }
 0x3d8   :  { %v2155_v11 = vld [vmem:[%s5012_s12 + $0x28] sm:$0xff]  ;;  %v2212_v12 = vld [vmem:[%s5012_s12 + $0x1f0] sm:$0xff] }
 0x3d9   :  { %v1652_v13 = vpop.f32.mrf.mxu0  ;;  %v1740_v14 = vpop.f32.mrf.mxu1 }
 0x3da   :  { %v2209_v14 = vld [vmem:[%s5012_s12 + $0x1d8] sm:$0xff] }
 0x3db   :  { %v3395_v15 = vpop.f32.mrf.mxu0  ;;  %v3415_v16 = vpop.f32.mrf.mxu1 }
 0x3dc   :  { %v2208_v15 = vld [vmem:[%s5012_s12 + $0x1d0] sm:$0xff] }
 0x3f5   :  { %v1828_v19 = vpop.f32.mrf.mxu0 }
 0x3f6   :  { %v1834_v20 = vadd.f32 %v1828_v19, %v1738_v17  ;;  %v2205_v17 = vld [vmem:[%s5012_s12 + $0x1b8] sm:$0xff] }
 0x3f7   :  { %v3434_v21 = vpop.f32.mrf.mxu0  ;;  %v2201_v19 = vld [vmem:[%s5012_s12 + $0x198] sm:$0xff] }
 0x3f8   :  { %v1841_v22 = vadd.f32 %v2706_v18, %v1834_v20  ;;  %v2200_v20 = vld [vmem:[%s5012_s12 + $0x190] sm:$0xff] }
 0x3f9   :  { %v1831_v23 = vpop.f32.mrf.mxu0  ;;  %v2196_v21 = vld [vmem:[%s5012_s12 + $0x170] sm:$0xff] }
 0x3fa   :  { %v1842_v24 = vmax.f32 %v1841_v22, 0.0  ;;  %v2193_v22 = vld [vmem:[%s5012_s12 + $0x158] sm:$0xff]  ;;  %v2192_v23 = vld [vmem:[%s5012_s12 + $0x150] sm:$0xff] }
 0x3fb   :  { %v3435_v25 = vpop.f32.mrf.mxu0 }
 0x3fc   :  { %1843 = vst [vmem:[#allocation6] sm:$0x3] %v1842_v24  ;;  %v2189_v24 = vld [vmem:[%s5012_s12 + $0x138] sm:$0xff]  ;;  %v2188_v25 = vld [vmem:[%s5012_s12 + $0x130] sm:$0xff] }
 0x3fd   :  { %v1884_v26 = vpop.f32.mrf.mxu1 }
 0x3ff   :  { %v3454_v27 = vpop.f32.mrf.mxu1 }
 0x400   :  { %v2184_v27 = vld [vmem:[%s5012_s12 + $0x110] sm:$0xff] }
 0x401   :  { %v1887_v28 = vpop.f32.mrf.mxu1 }
 0x402   :  { %v2181_v28 = vld [vmem:[%s5012_s12 + $0xf8] sm:$0xff] }
 0x403   :  { %v3455_v29 = vpop.f32.mrf.mxu1 }
 0x404   :  { %v2180_v29 = vld [vmem:[%s5012_s12 + $0xf0] sm:$0xff] }
 0x415   :  { %v1924_v30 = vpop.f32.mrf.mxu0 }
 0x416   :  { %v1925_v34 = vadd.f32 %v1924_v30, %v1884_v26  ;;  %v2185_v26 = vld [vmem:[%s5012_s12 + $0x118] sm:$0xff] }
 0x417   :  { %v3474_v31 = vpop.f32.mrf.mxu0  ;;  %v2177_v30 = vld [vmem:[%s5012_s12 + $0xd8] sm:$0xff] }
 0x418   :  { %v2176_v31 = vld [vmem:[%s5012_s12 + $0xd0] sm:$0xff] }
 0x419   :  { %v1927_v32 = vpop.f32.mrf.mxu0 }
 0x41a   :  { %v2173_v32 = vld [vmem:[%s5012_s12 + $0xb8] sm:$0xff] }
 0x41b   :  { %v3475_v33 = vpop.f32.mrf.mxu0 }
 0x41c   :  { %v2172_v33 = vld [vmem:[%s5012_s12 + $0xb0] sm:$0xff] }
 0x41d   :  { %v1967_v35 = vpop.f32.mrf.mxu1 }
 0x41e   :  { %v1973_v36 = vadd.f32 %v1967_v35, %v1925_v34  ;;  %v2169_v34 = vld [vmem:[%s5012_s12 + $0x98] sm:$0xff]  ;;  %v2168_v35 = vld [vmem:[%s5012_s12 + $0x90] sm:$0xff] }
 0x41f   :  { %v3494_v37 = vpop.f32.mrf.mxu1 }
 0x420   :  { %v1974_v38 = vadd.f32 %v2706_v18, %v1973_v36  ;;  %v2204_v18 = vld [vmem:[%s5012_s12 + $0x1b0] sm:$0xff]  ;;  %v2165_v36 = vld [vmem:[%s5012_s12 + $0x78] sm:$0xff] }
 0x421   :  { %v1970_v39 = vpop.f32.mrf.mxu1  ;;  %v2164_v37 = vld [vmem:[%s5012_s12 + $0x70] sm:$0xff] }
 0x422   :  { %v1975_v40 = vmax.f32 %v1974_v38, 0.0  ;;  %v2161_v38 = vld [vmem:[%s5012_s12 + $0x58] sm:$0xff]  ;;  %v2160_v39 = vld [vmem:[%s5012_s12 + $0x50] sm:$0xff] }
 0x423   :  { %v3495_v41 = vpop.f32.mrf.mxu1 }
 0x424   :  { %1976 = vst [vmem:[#allocation6 + $0x2] sm:$0x3] %v1975_v40  ;;  %v2157_v40 = vld [vmem:[%s5012_s12 + $0x38] sm:$0xff]  ;;  %v2154_v41 = vld [vmem:[%s5012_s12 + $0x20] sm:$0xff] }
 0x42b   :  { %v1978_v43 = vld [vmem:[#allocation6] sm:$0xf] }
 0x42c   :  { %3497 = vmatpush3.msk.msra.mxu0 %vm1983_vm3, %v1978_v43  ;;  %v2151_v43 = vld [vmem:[%s5012_s12 + $0x8] sm:$0xff] }
 0x42d   :  { %3499 = vmatmul.mubr.msk.f32.vlgmr.msra.gmra.mxu0 %vm1979_vm4, %v1977_v42  ;;  %2236 = vmatprep.subr.mxu0 %v2211_v45  ;;  %v2156_v42 = vld [vmem:[%s5012_s12 + $0x30] sm:$0xff]  ;;  %v2150_v45 = vld [vmem:[%s5012_s12] sm:$0xff] }
 0x42e   :  { %2300 = vmatprep.mubr.f32.mxu0 %v3735_v0  ;;  %2237 = vmatpush1.msra.mxu0 %v2210_v47  ;;  %v2152_v47 = vld [vmem:[%s5012_s12 + $0x10] sm:$0xff] }
 0x42f   :  { %2238 = vmatprep.subr.mxu0 %v2207_v46  ;;  %v2409_v46 = vld [vmem:[%s5014_s14 + $0xf8] sm:$0xff] }
 0x430   :  { %2239 = vmatpush1.msra.mxu0 %v2206_v49  ;;  %v2709_v49 = vld [vmem:[%s5011_s11] ss:$0 sm:$0xff] }
 0x431   :  { %2240 = vmatprep.subr.mxu0 %v2203_v50 }
 0x432   :  { %2241 = vmatpush1.msra.mxu0 %v2202_v51 }
 0x433   :  { %2242 = vmatprep.subr.mxu0 %v2199_v53  ;;  %v2393_v53 = vld [vmem:[%s5014_s14 + $0x78] sm:$0xff] }
 0x434   :  { %2243 = vmatpush1.msra.mxu0 %v2198_v52  ;;  %v2425_v52 = vld [vmem:[%s5014_s14 + $0x178] sm:$0xff] }
 0x435   :  { %2244 = vmatprep.subr.mxu0 %v2195_v54 }
 0x436   :  { %2245 = vmatpush1.msra.mxu0 %v2194_v55  ;;  %v2408_v55 = vld [vmem:[%s5014_s14 + $0xf0] sm:$0xff] }
 0x437   :  { %2246 = vmatprep.subr.mxu0 %v2191_v56  ;;  %v2440_v56 = vld [vmem:[%s5014_s14 + $0x1f0] sm:$0xff] }
 0x438   :  { %2247 = vmatpush1.msra.mxu0 %v2190_v57  ;;  %v2392_v57 = vld [vmem:[%s5014_s14 + $0x70] sm:$0xff] }
 0x439   :  { %2248 = vmatprep.subr.mxu0 %v2187_v58  ;;  %v2424_v58 = vld [vmem:[%s5014_s14 + $0x170] sm:$0xff] }
 0x43a   :  { %2249 = vmatpush1.msra.mxu0 %v2186_v59  ;;  %v2407_v59 = vld [vmem:[%s5014_s14 + $0xe8] sm:$0xff] }
 0x43b   :  { %2250 = vmatprep.subr.mxu0 %v2183_v60  ;;  %v2439_v60 = vld [vmem:[%s5014_s14 + $0x1e8] sm:$0xff] }
 0x43c   :  { %2251 = vmatpush1.msra.mxu0 %v2182_v61  ;;  %v2391_v61 = vld [vmem:[%s5014_s14 + $0x68] sm:$0xff] }
 0x43d   :  { %2252 = vmatprep.subr.mxu0 %v2179_v62  ;;  %v2423_v62 = vld [vmem:[%s5014_s14 + $0x168] sm:$0xff] }
 0x43e   :  { %2253 = vmatpush1.msra.mxu0 %v2178_v63  ;;  %v2406_v63 = vld [vmem:[%s5014_s14 + $0xe0] sm:$0xff] }
 0x43f   :  { %2254 = vmatprep.subr.mxu0 %v2175_v1  ;;  %v2438_v1 = vld [vmem:[%s5014_s14 + $0x1e0] sm:$0xff] }
 0x440   :  { %2255 = vmatpush1.msra.mxu0 %v2174_v2  ;;  %v2390_v2 = vld [vmem:[%s5014_s14 + $0x60] sm:$0xff] }
 0x441   :  { %2256 = vmatprep.subr.mxu0 %v2171_v3  ;;  %v2422_v3 = vld [vmem:[%s5014_s14 + $0x160] sm:$0xff] }
 0x442   :  { %2257 = vmatpush1.msra.mxu0 %v2170_v4  ;;  %v2405_v4 = vld [vmem:[%s5014_s14 + $0xd8] sm:$0xff] }
 0x443   :  { %2258 = vmatprep.subr.mxu0 %v2167_v5  ;;  %v2437_v5 = vld [vmem:[%s5014_s14 + $0x1d8] sm:$0xff] }
 0x444   :  { %2259 = vmatpush1.msra.mxu0 %v2166_v6  ;;  %v2389_v6 = vld [vmem:[%s5014_s14 + $0x58] sm:$0xff] }
 0x445   :  { %2260 = vmatprep.subr.mxu0 %v2163_v7  ;;  %v2421_v7 = vld [vmem:[%s5014_s14 + $0x158] sm:$0xff] }
 0x446   :  { %2261 = vmatpush1.msra.mxu0 %v2162_v8  ;;  %v2404_v8 = vld [vmem:[%s5014_s14 + $0xd0] sm:$0xff] }
 0x447   :  { %2262 = vmatprep.subr.mxu0 %v2159_v9  ;;  %v2436_v9 = vld [vmem:[%s5014_s14 + $0x1d0] sm:$0xff] }
 0x448   :  { %2263 = vmatpush1.msra.mxu0 %v2158_v10  ;;  %v2388_v10 = vld [vmem:[%s5014_s14 + $0x50] sm:$0xff] }
 0x449   :  { %2264 = vmatprep.subr.mxu0 %v2155_v11  ;;  %v2420_v11 = vld [vmem:[%s5014_s14 + $0x150] sm:$0xff] }
 0x44a   :  { %2265 = vmatpush1.msra.mxu0 %v2154_v41  ;;  %v2380_v41 = vld [vmem:[%s5014_s14 + $0x10] sm:$0xff] }
 0x44b   :  { %2266 = vmatprep.subr.mxu0 %v2151_v43  ;;  %v2395_v43 = vld [vmem:[%s5014_s14 + $0x88] sm:$0xff] }
 0x44c   :  { %2267 = vmatpush1.msra.mxu0 %v2150_v45  ;;  %v2379_v45 = vld [vmem:[%s5014_s14 + $0x8] sm:$0xff] }
 0x44d   :  { %2946 = vmatprep.subr.mxu0 %v2409_v46  ;;  %v2394_v46 = vld [vmem:[%s5014_s14 + $0x80] sm:$0xff] }
 0x4ed   :  { %v2053_v13 = vpop.f32.mrf.mxu0 }
 0x4ee   :  { %3534 = vmatmul.mubr.f32.vlgmr.msra.gmra.mxu1 %v2053_v13  ;;  %v2435_v13 = vld [vmem:[%s5014_s14 + $0x1c8] sm:$0xff] }
 0x4ef   :  { %v3500_v16 = vpop.f32.mrf.mxu0  ;;  %2308 = vmatpush1.msra.mxu1 %v2212_v12  ;;  %2371 = vmatprep.mubr.f32.mxu1 %v3735_v0  ;;  %v2197_v0 = vld [vmem:[%s5012_s12 + $0x178] sm:$0xff]  ;;  %v2403_v12 = vld [vmem:[%s5014_s14 + $0xc8] sm:$0xff] }
 0x4f0   :  { %2309 = vmatprep.subr.mxu1 %v2209_v14  ;;  %v2387_v14 = vld [vmem:[%s5014_s14 + $0x48] sm:$0xff]  ;;  %v2402_v16 = vld [vmem:[%s5014_s14 + $0xc0] sm:$0xff] }
 0x4f1   :  { %2310 = vmatpush1.msra.mxu1 %v2208_v15  ;;  %v2419_v15 = vld [vmem:[%s5014_s14 + $0x148] sm:$0xff] }
 0x4f2   :  { %2311 = vmatprep.subr.mxu1 %v2205_v17  ;;  %v2434_v17 = vld [vmem:[%s5014_s14 + $0x1c0] sm:$0xff] }
 0x4f3   :  { %2312 = vmatpush1.msra.mxu1 %v2204_v18  ;;  %v2386_v18 = vld [vmem:[%s5014_s14 + $0x40] sm:$0xff] }
 0x4f4   :  { %2313 = vmatprep.subr.mxu1 %v2201_v19  ;;  %v2418_v19 = vld [vmem:[%s5014_s14 + $0x140] sm:$0xff] }
 0x4f5   :  { %2314 = vmatpush1.msra.mxu1 %v2200_v20  ;;  %v2401_v20 = vld [vmem:[%s5014_s14 + $0xb8] sm:$0xff] }
 0x4f6   :  { %2315 = vmatprep.subr.mxu1 %v2197_v0  ;;  %v2433_v0 = vld [vmem:[%s5014_s14 + $0x1b8] sm:$0xff] }
 0x4f7   :  { %2316 = vmatpush1.msra.mxu1 %v2196_v21  ;;  %v2385_v21 = vld [vmem:[%s5014_s14 + $0x38] sm:$0xff] }
 0x4f8   :  { %2317 = vmatprep.subr.mxu1 %v2193_v22  ;;  %v2417_v22 = vld [vmem:[%s5014_s14 + $0x138] sm:$0xff] }
 0x4f9   :  { %2318 = vmatpush1.msra.mxu1 %v2192_v23  ;;  %v2400_v23 = vld [vmem:[%s5014_s14 + $0xb0] sm:$0xff] }
 0x4fa   :  { %2319 = vmatprep.subr.mxu1 %v2189_v24  ;;  %v2432_v24 = vld [vmem:[%s5014_s14 + $0x1b0] sm:$0xff] }
 0x4fb   :  { %2320 = vmatpush1.msra.mxu1 %v2188_v25  ;;  %v2384_v25 = vld [vmem:[%s5014_s14 + $0x30] sm:$0xff] }
 0x4fc   :  { %2321 = vmatprep.subr.mxu1 %v2185_v26  ;;  %v2416_v26 = vld [vmem:[%s5014_s14 + $0x130] sm:$0xff] }
 0x4fd   :  { %2322 = vmatpush1.msra.mxu1 %v2184_v27  ;;  %v2399_v27 = vld [vmem:[%s5014_s14 + $0xa8] sm:$0xff] }
 0x4fe   :  { %2323 = vmatprep.subr.mxu1 %v2181_v28  ;;  %v2431_v28 = vld [vmem:[%s5014_s14 + $0x1a8] sm:$0xff] }
 0x4ff   :  { %2324 = vmatpush1.msra.mxu1 %v2180_v29  ;;  %v2383_v29 = vld [vmem:[%s5014_s14 + $0x28] sm:$0xff] }
 0x500   :  { %2325 = vmatprep.subr.mxu1 %v2177_v30  ;;  %v2415_v30 = vld [vmem:[%s5014_s14 + $0x128] sm:$0xff] }
 0x501   :  { %2326 = vmatpush1.msra.mxu1 %v2176_v31  ;;  %v2398_v31 = vld [vmem:[%s5014_s14 + $0xa0] sm:$0xff] }
 0x502   :  { %2327 = vmatprep.subr.mxu1 %v2173_v32  ;;  %v2430_v32 = vld [vmem:[%s5014_s14 + $0x1a0] sm:$0xff] }
 0x503   :  { %2328 = vmatpush1.msra.mxu1 %v2172_v33  ;;  %v2382_v33 = vld [vmem:[%s5014_s14 + $0x20] sm:$0xff] }
 0x504   :  { %2329 = vmatprep.subr.mxu1 %v2169_v34  ;;  %v2414_v34 = vld [vmem:[%s5014_s14 + $0x120] sm:$0xff] }
 0x505   :  { %2330 = vmatpush1.msra.mxu1 %v2168_v35  ;;  %v2397_v35 = vld [vmem:[%s5014_s14 + $0x98] sm:$0xff] }
 0x506   :  { %2331 = vmatprep.subr.mxu1 %v2165_v36  ;;  %v2381_v36 = vld [vmem:[%s5014_s14 + $0x18] sm:$0xff] }
 0x507   :  { %2332 = vmatpush1.msra.mxu1 %v2164_v37  ;;  %v2429_v37 = vld [vmem:[%s5014_s14 + $0x198] sm:$0xff] }
 0x508   :  { %2333 = vmatprep.subr.mxu1 %v2161_v38  ;;  %v2413_v38 = vld [vmem:[%s5014_s14 + $0x118] sm:$0xff] }
 0x509   :  { %2334 = vmatpush1.msra.mxu1 %v2160_v39  ;;  %v2396_v39 = vld [vmem:[%s5014_s14 + $0x90] sm:$0xff] }
 0x50a   :  { %2335 = vmatprep.subr.mxu1 %v2157_v40  ;;  %v2428_v40 = vld [vmem:[%s5014_s14 + $0x190] sm:$0xff] }
 0x50b   :  { %2336 = vmatpush1.msra.mxu1 %v2156_v42  ;;  %v2412_v42 = vld [vmem:[%s5014_s14 + $0x110] sm:$0xff] }
 0x50c   :  { %2337 = vmatprep.subr.mxu1 %v2153_v44  ;;  %v2427_v44 = vld [vmem:[%s5014_s14 + $0x188] sm:$0xff] }
 0x50d   :  { %2338 = vmatpush1.msra.mxu1 %v2152_v47  ;;  %v2411_v47 = vld [vmem:[%s5014_s14 + $0x108] sm:$0xff] }
 0x50e   :  { %2981 = vmatprep.subr.mxu1 %v2441_v48  ;;  %v2378_v48 = vld [vmem:[%s5014_s14] sm:$0xff] }
 0x5ae   :  { %v2146_v50 = vpop.f32.mrf.mxu1 }
 0x5af   :  { %v2147_v51 = vadd.f32 %v2709_v49, %v2146_v50  ;;  %v2426_v49 = vld [vmem:[%s5014_s14 + $0x180] sm:$0xff] }
 0x5b0   :  { %v3535_v54 = vpop.f32.mrf.mxu1  ;;  %v2410_v50 = vld [vmem:[%s5014_s14 + $0x100] sm:$0xff] }
 0x5b1   :  { %2301 = vmatmul.mubr.f32.vlgmr.msra.gmra.mxu0 %v2147_v51  ;;  %2372 = vmatmul.mubr.f32.vlgmr.msra.gmra.mxu1 %v2147_v51  ;;  %v2216_v51 = vlaneseq }
 0x5b2   :  { %2947 = vmatpush3.msra.mxu0 %v2393_v53  ;;  %2982 = vmatpush3.msra.mxu1 %v2425_v52 }
 0x5b3   :  { %2948 = vmatprep.subr.mxu0 %v2408_v55  ;;  %2983 = vmatprep.subr.mxu1 %v2440_v56  ;;  %v2217_v53 = vshrl.u32 %v2216_v51, 7 }
 0x5b4   :  { %2949 = vmatpush3.msra.mxu0 %v2392_v57  ;;  %2984 = vmatpush3.msra.mxu1 %v2424_v58  ;;  %v2214_v57 = vld [vmem:[%s5013_s13] sm:$0xf] }
 0x5b5   :  { %2950 = vmatprep.subr.mxu0 %v2407_v59  ;;  %2985 = vmatprep.subr.mxu1 %v2439_v60  ;;  %v2222_v52 = vsub.s32 1, %v2217_v53  ;;  %v2230_v54 = vsub.s32 3, %v2217_v53  ;;  %v2218_v55 = vsub.s32 0, %v2217_v53  ;;  %v2226_v56 = vsub.s32 2, %v2217_v53 }
 0x5b6   :  { %2951 = vmatpush3.msra.mxu0 %v2391_v61  ;;  %2986 = vmatpush3.msra.mxu1 %v2423_v62 }
 0x5b7   :  { %2952 = vmatprep.subr.mxu0 %v2406_v63  ;;  %2987 = vmatprep.subr.mxu1 %v2438_v1  ;;  %v2223_v58 = vrot.slane %v2214_v57, %v2222_v52  ;;  %v2231_v59 = vrot.slane %v2214_v57, %v2230_v54  ;;  %v2219_v60 = vrot.slane %v2214_v57, %v2218_v55 }
 0x5b8   :  { %2953 = vmatpush3.msra.mxu0 %v2390_v2  ;;  %2988 = vmatpush3.msra.mxu1 %v2422_v3  ;;  %v2227_v62 = vrot.slane %v2214_v57, %v2226_v56 }
 0x5b9   :  { %2954 = vmatprep.subr.mxu0 %v2405_v4  ;;  %2989 = vmatprep.subr.mxu1 %v2437_v5 }
 0x5ba   :  { %2955 = vmatpush3.msra.mxu0 %v2389_v6  ;;  %2990 = vmatpush3.msra.mxu1 %v2421_v7 }
 0x5bb   :  { %2956 = vmatprep.subr.mxu0 %v2404_v8  ;;  %2991 = vmatprep.subr.mxu1 %v2436_v9  ;;  %v2710_v9 = vld [vmem:[%s5015_s15] ss:$0 sm:$0xff] }
 0x5bc   :  { %2957 = vmatpush3.msra.mxu0 %v2388_v10  ;;  %2992 = vmatpush3.msra.mxu1 %v2420_v11 }
 0x5bd   :  { %2958 = vmatprep.subr.mxu0 %v2403_v12  ;;  %2993 = vmatprep.subr.mxu1 %v2435_v13 }
 0x5be   :  { %2959 = vmatpush3.msra.mxu0 %v2387_v14  ;;  %2994 = vmatpush3.msra.mxu1 %v2419_v15 }
 0x5bf   :  { %2960 = vmatprep.subr.mxu0 %v2402_v16  ;;  %2995 = vmatprep.subr.mxu1 %v2434_v17 }
 0x5c0   :  { %2961 = vmatpush3.msra.mxu0 %v2386_v18  ;;  %2996 = vmatpush3.msra.mxu1 %v2418_v19 }
 0x5c1   :  { %2962 = vmatprep.subr.mxu0 %v2401_v20  ;;  %2997 = vmatprep.subr.mxu1 %v2433_v0 }
 0x5c2   :  { %2963 = vmatpush3.msra.mxu0 %v2385_v21  ;;  %2998 = vmatpush3.msra.mxu1 %v2417_v22 }
 0x5c3   :  { %2964 = vmatprep.subr.mxu0 %v2400_v23  ;;  %2999 = vmatprep.subr.mxu1 %v2432_v24 }
 0x5c4   :  { %2965 = vmatpush3.msra.mxu0 %v2384_v25  ;;  %3000 = vmatpush3.msra.mxu1 %v2416_v26 }
 0x5c5   :  { %2966 = vmatprep.subr.mxu0 %v2399_v27  ;;  %3001 = vmatprep.subr.mxu1 %v2431_v28 }
 0x5c6   :  { %2967 = vmatpush3.msra.mxu0 %v2383_v29  ;;  %3002 = vmatpush3.msra.mxu1 %v2415_v30 }
 0x5c7   :  { %2968 = vmatprep.subr.mxu0 %v2398_v31  ;;  %3003 = vmatprep.subr.mxu1 %v2430_v32 }
 0x5c8   :  { %2969 = vmatpush3.msra.mxu0 %v2382_v33  ;;  %3004 = vmatpush3.msra.mxu1 %v2414_v34 }
 0x5c9   :  { %2970 = vmatprep.subr.mxu0 %v2397_v35  ;;  %3005 = vmatprep.subr.mxu1 %v2429_v37 }
 0x5ca   :  { %2971 = vmatpush3.msra.mxu0 %v2381_v36  ;;  %3006 = vmatpush3.msra.mxu1 %v2413_v38 }
 0x5cb   :  { %2972 = vmatprep.subr.mxu0 %v2396_v39  ;;  %3007 = vmatprep.subr.mxu1 %v2428_v40 }
 0x5cc   :  { %2973 = vmatpush3.msra.mxu0 %v2380_v41  ;;  %3008 = vmatpush3.msra.mxu1 %v2412_v42 }
 0x5cd   :  { %2974 = vmatprep.subr.mxu0 %v2395_v43  ;;  %3009 = vmatprep.subr.mxu1 %v2427_v44 }
 0x5ce   :  { %2975 = vmatpush3.msra.mxu0 %v2379_v45  ;;  %3010 = vmatpush3.msra.mxu1 %v2411_v47 }
 0x5cf   :  { %2976 = vmatprep.subr.mxu0 %v2394_v46  ;;  %3011 = vmatprep.subr.mxu1 %v2426_v49 }
 0x5d0   :  { %2977 = vmatpush3.msra.mxu0 %v2378_v48  ;;  %3012 = vmatpush3.msra.mxu1 %v2410_v50 }
 0x671   :  { %v2302_v61 = vpop.f32.mrf.mxu0  ;;  %v2373_v63 = vpop.f32.mrf.mxu1 }
 0x672   :  { %v2303_v5 = vadd.f32 %v2302_v61, %v2219_v60  ;;  %v2374_v6 = vadd.f32 %v2373_v63, %v2227_v62 }
 0x673   :  { %v2304_v1 = vpop.f32.mrf.mxu0  ;;  %v2375_v2 = vpop.f32.mrf.mxu1 }
 0x674   :  { %v2305_v3 = vadd.f32 %v2304_v1, %v2223_v58  ;;  %v2376_v4 = vadd.f32 %v2375_v2, %v2231_v59 }
 0x676   :  { %2513 = vmatprep.mubr.f32.mxu0 %v2305_v3  ;;  %2583 = vmatprep.mubr.f32.mxu1 %v2376_v4 }
 0x677   :  { %2514 = vmatmul.mubr.f32.vlgmr.msra.gmra.mxu0 %v2303_v5  ;;  %2584 = vmatmul.mubr.f32.vlgmr.msra.gmra.mxu1 %v2374_v6 }
 0x737   :  { %v2978_v7 = vpop.f32.mrf.mxu0  ;;  %v3013_v8 = vpop.f32.mrf.mxu1 }
 0x739   :  { %v2979_v10 = vpop.f32.mrf.mxu0  ;;  %v3014_v11 = vpop.f32.mrf.mxu1 }
 0x73a   :  { %v2980_v12 = vadd.f32 %v2979_v10, %v2978_v7  ;;  %v3015_v14 = vadd.f32 %v3014_v11, %v3013_v8 }
 0x73c   :  { %v2516_v13 = vadd.f32 %v2980_v12, %v2710_v9 }
 0x73e   :  { %v2586_v15 = vadd.f32 %v3015_v14, %v2516_v13 }
 0x740   :  { %2590 = vst.msk [vmem:[#allocation13] sm:$0x3] %vm2589_vm5, %v2586_v15 }
 0x741   :  { %3713 = shalt.err (!%p3710_p5)
}
 0x742   :  { %2600 = dma.vmem_to_hbm [thread:$0]  %s2598_s5, 32, %s5016_s16, [#allocation9]  }
 0x743   :  { %3726 = dma.done.wait [#allocation9], 32  }
 0x744   :  { %3727 = vsyncadd [#allocation9], 4294967264 }
 0x745   :  { %2604 = vsyncpa [#allocation8], 1 }
 0x746   :  { %2605 = vsyncpa [#allocation11], 1 }
 0x747   :  { %2606 = vsyncpa [#allocation9], 1 }

</bundles_post_ra>
